<compile_context>
chip_gen: v6e
topology: v6e:2x2x1
jax: 0.10.0
libtpu: 0.0.40
codegen_flags: <defaults>
</compile_context>

<pallas_src>
import functools
import math
from functools import reduce
from operator import mul

import jax
import jax.numpy as jnp
from jax.experimental import pallas as pl
from jax.experimental.pallas import tpu as pltpu

# ------------------------- synthetic small CLIP-ViT config -------------------------
B = 2                      # batch
C_IN = 3                   # RGB
IMG = 32                   # cfg.INPUT.SIZE[0]
PATCH = 16                 # patch_size (16, 16) as in the module
GRID_HW = IMG // PATCH     # 2
NUM_PATCHES = GRID_HW * GRID_HW      # 4
HIDDEN = 32                # transformer hidden_size
HEADS = 2
HEAD_DIM = HIDDEN // HEADS
INTER = 64                 # MLP intermediate size
N_LAYERS = 2               # num_hidden_layers
PROMPT_LEN = 4             # cfg.TRAINER.COOP.N_PLN
PROMPT_DIM = HIDDEN // 2   # int(hidden_size / 2)
PMT_DEEP = True            # cfg.TRAINER.COOP.PMT_DEEP
EPS = 1e-5                 # CLIP layer_norm_eps
SEQ0 = 1 + NUM_PATCHES               # 5  (CLS + patches)
SEQ = 1 + PROMPT_LEN + NUM_PATCHES   # 9  (CLS + prompts + patches)
ATTN_SCALE = HEAD_DIM ** -0.5

_LAYER_KEYS = ("ln1_g", "ln1_b", "wqkv", "bqkv", "wo", "bo",
               "ln2_g", "ln2_b", "w1", "b1", "w2", "b2")


# =============================== Pallas kernel ===============================
def _vpt_vit_kernel(patch_ref, wpatch_ref, cls_ref, pos_ref, preg_ref, preb_ref,
                    praw_ref, wproj_ref, bproj_ref,
                    ln1g_ref, ln1b_ref, wqkv_ref, bqkv_ref, wo_ref, bo_ref,
                    ln2g_ref, ln2b_ref, w1_ref, b1_ref, w2_ref, b2_ref,
                    postg_ref, postb_ref,
                    o_ref, pooled_ref, h_scr, *, inject_prompts):
    """Grid = (batch, layer).  One grid step == one CLIPEncoderLayer for one batch
       element.  The per-batch [SEQ, HIDDEN] residual stream lives in VMEM scratch
       across the layer axis.  Layer 0 additionally runs the fused embedding
       prologue; the last layer also emits the post-LN pooled CLS row."""
    layer = pl.program_id(1)

    def ln(v, g, beta):
        m = jnp.mean(v, axis=-1, keepdims=True)
        var = jnp.mean(jnp.square(v - m), axis=-1, keepdims=True)
        return (v - m) * jax.lax.rsqrt(var + EPS) * g + beta

    def project_prompt():
        # promptt_proj(prompt_set); promptt_dropout is identity at inference time.
        return (jnp.dot(praw_ref[0], wproj_ref[...],
                        preferred_element_type=jnp.float32) + bproj_ref[...])

    # ---- layer-0 prologue: CLIPVisionEmbeddings + pre_layrnorm + incorporate_prompt ----
    @pl.when(layer == 0)
    def _():
        # Patch-embedding conv (bias-free) as one bf16 im2col matmul for this batch.
        pe = jnp.dot(patch_ref[0], wpatch_ref[...],
                     preferred_element_type=jnp.float32)                   # [NP, H]
        emb = jnp.concatenate([cls_ref[...], pe], axis=0) + pos_ref[...]   # [SEQ0, H]
        emb = ln(emb, preg_ref[...], preb_ref[...])                        # pre_layrnorm
        pr0 = project_prompt()                                             # shallow prompt
        # Prompt rows are NOT pre-LN'd (incorporate_prompt runs after pre_layrnorm).
        h_scr[...] = jnp.concatenate([emb[0:1, :], pr0, emb[1:, :]], axis=0)

    # ---- deep VPT: replace prompt rows with this layer's projected deep prompt ----
    if inject_prompts:
        @pl.when(layer > 0)
        def _():
            h_scr[1:1 + PROMPT_LEN, :] = project_prompt()

    x = h_scr[...]                                                         # [SEQ, H] f32

    # ------------- self-attention (fused QKV; attn scale folded into wq/bq) -------------
    ln1 = ln(x, ln1g_ref[0], ln1b_ref[0])
    qkv = jnp.dot(ln1.astype(jnp.bfloat16), wqkv_ref[0],
                  preferred_element_type=jnp.float32) + bqkv_ref[0]        # [SEQ, 3H]

    # Head split via lane slices stacked on a leading batch axis, then one batched
    # einsum per stage (single MXU dispatch instead of HEADS tiny matmuls).
    def heads_of(t):
        return jnp.stack([t[:, h * HEAD_DIM:(h + 1) * HEAD_DIM] for h in range(HEADS)],
                         axis=0).astype(jnp.bfloat16)                      # [HEADS, SEQ, HD]

    qh = heads_of(qkv[:, 0:HIDDEN])
    kh = heads_of(qkv[:, HIDDEN:2 * HIDDEN])
    vh = heads_of(qkv[:, 2 * HIDDEN:3 * HIDDEN])

    s = jnp.einsum('hqd,hkd->hqk', qh, kh,
                   preferred_element_type=jnp.float32)                     # [HEADS, S, S]
    s = s - jnp.max(s, axis=-1, keepdims=True)
    p = jnp.exp(s)
    p = p * pl.reciprocal(jnp.sum(p, axis=-1, keepdims=True), approx=True)
    ctx_h = jnp.einsum('hqk,hkd->hqd', p.astype(jnp.bfloat16), vh,
                       preferred_element_type=jnp.float32)                 # [HEADS, S, HD]
    ctx = jnp.concatenate([ctx_h[h] for h in range(HEADS)], axis=-1)       # [SEQ, H]

    attn = jnp.dot(ctx.astype(jnp.bfloat16), wo_ref[0],
                   preferred_element_type=jnp.float32) + bo_ref[0]
    x = x + attn

    # ---------------- MLP (quick_gelu, as in CLIP) ----------------
    ln2 = ln(x, ln2g_ref[0], ln2b_ref[0])
    h1 = jnp.dot(ln2.astype(jnp.bfloat16), w1_ref[0],
                 preferred_element_type=jnp.float32) + b1_ref[0]
    h1 = h1 * jax.nn.sigmoid(1.702 * h1)
    h2 = jnp.dot(h1.astype(jnp.bfloat16), w2_ref[0],
                 preferred_element_type=jnp.float32) + b2_ref[0]
    x = x + h2

    h_scr[...] = x

    # ---- last layer: emit last_hidden_state and post_layernorm'd pooled CLS ----
    @pl.when(layer == pl.num_programs(1) - 1)
    def _():
        o_ref[0] = x.astype(o_ref.dtype)
        pooled_ref[0] = ln(x[0:1, :], postg_ref[...],
                           postb_ref[...]).astype(pooled_ref.dtype)


def pallas_prompted_vit(patches, packed, *, inject_prompts):
    n_layers = packed["wqkv"].shape[0]
    cpp = patches.shape[-1]

    def bcast_spec(shape):
        nd = len(shape)
        return pl.BlockSpec(shape, lambda *_: (0,) * nd)

    def layer_spec(arr):
        return pl.BlockSpec((1,) + arr.shape[1:], lambda b, l: (l, 0, 0))

    if inject_prompts:
        praw_spec = pl.BlockSpec((1, PROMPT_LEN, PROMPT_DIM), lambda b, l: (l, 0, 0))
    else:
        praw_spec = pl.BlockSpec((1, PROMPT_LEN, PROMPT_DIM), lambda b, l: (0, 0, 0))

    in_specs = ([pl.BlockSpec((1, NUM_PATCHES, cpp), lambda b, l: (b, 0, 0)),  # patches
                 bcast_spec(packed["w_patch"].shape),
                 bcast_spec(packed["class_emb"].shape),
                 bcast_spec(packed["pos_emb"].shape),
                 bcast_spec(packed["pre_ln_g"].shape),
                 bcast_spec(packed["pre_ln_b"].shape),
                 praw_spec,
                 bcast_spec(packed["wproj"].shape),
                 bcast_spec(packed["bproj"].shape)]
                + [layer_spec(packed[k]) for k in _LAYER_KEYS]
                + [bcast_spec(packed["post_ln_g"].shape),
                   bcast_spec(packed["post_ln_b"].shape)])

    kernel = functools.partial(_vpt_vit_kernel, inject_prompts=inject_prompts)
    return pl.pallas_call(
        kernel,
        out_shape=(jax.ShapeDtypeStruct((B, SEQ, HIDDEN), jnp.float32),
                   jax.ShapeDtypeStruct((B, 1, HIDDEN), jnp.float32)),
        grid=(B, n_layers),
        in_specs=in_specs,
        out_specs=(pl.BlockSpec((1, SEQ, HIDDEN), lambda b, l: (b, 0, 0)),
                   pl.BlockSpec((1, 1, HIDDEN), lambda b, l: (b, 0, 0))),
        scratch_shapes=[pltpu.VMEM((SEQ, HIDDEN), jnp.float32)],
        compiler_params=pltpu.CompilerParams(
            # layer axis carries the residual stream in scratch -> must be sequential;
            # batch axis can shard over the 2 TensorCores on v7x.
            dimension_semantics=("parallel", "arbitrary"),
            vmem_limit_bytes=32 * 1024 * 1024),
    )(patches, packed["w_patch"], packed["class_emb"], packed["pos_emb"],
      packed["pre_ln_g"], packed["pre_ln_b"], packed["prompts_raw"],
      packed["wproj"], packed["bproj"],
      *[packed[k] for k in _LAYER_KEYS],
      packed["post_ln_g"], packed["post_ln_b"])


# ------------------------------- parameters -------------------------------
def init_params(key):
    keys = list(jax.random.split(key, 64))
    ki = iter(keys)

    def nrm(shape, scale=0.02):
        return scale * jax.random.normal(next(ki), shape, jnp.float32)

    p = {}
    # CLIPVisionEmbeddings
    p["conv_w"] = nrm((HIDDEN, C_IN, PATCH, PATCH))          # patch conv, bias=False
    p["class_emb"] = nrm((HIDDEN,))
    p["pos_emb"] = nrm((SEQ0, HIDDEN))
    # pre / post layernorms
    p["pre_ln_g"] = jnp.ones((1, HIDDEN), jnp.float32)
    p["pre_ln_b"] = jnp.zeros((1, HIDDEN), jnp.float32)
    p["post_ln_g"] = jnp.ones((1, HIDDEN), jnp.float32)
    p["post_ln_b"] = jnp.zeros((1, HIDDEN), jnp.float32)
    # VPT prompt params (same init rule as the PyTorch module)
    val = math.sqrt(6.0 / float(3 * reduce(mul, (PATCH, PATCH), 1) + PROMPT_DIM))
    p["prompt_emb"] = jax.random.uniform(next(ki), (1, PROMPT_LEN, PROMPT_DIM),
                                         jnp.float32, -val, val)
    if PMT_DEEP:
        p["deep_prompt_emb"] = jax.random.uniform(
            next(ki), (N_LAYERS - 1, PROMPT_LEN, PROMPT_DIM), jnp.float32, -val, val)
    p["wproj"] = nrm((PROMPT_DIM, HIDDEN))                   # promptt_proj
    p["bproj"] = jnp.zeros((1, HIDDEN), jnp.float32)
    # encoder layers
    layers = []
    for _ in range(N_LAYERS):
        layers.append({
            "ln1_g": jnp.ones((1, HIDDEN), jnp.float32),
            "ln1_b": jnp.zeros((1, HIDDEN), jnp.float32),
            "wq": nrm((HIDDEN, HIDDEN)), "bq": jnp.zeros((1, HIDDEN), jnp.float32),
            "wk": nrm((HIDDEN, HIDDEN)), "bk": jnp.zeros((1, HIDDEN), jnp.float32),
            "wv": nrm((HIDDEN, HIDDEN)), "bv": jnp.zeros((1, HIDDEN), jnp.float32),
            "wo": nrm((HIDDEN, HIDDEN)), "bo": jnp.zeros((1, HIDDEN), jnp.float32),
            "ln2_g": jnp.ones((1, HIDDEN), jnp.float32),
            "ln2_b": jnp.zeros((1, HIDDEN), jnp.float32),
            "w1": nrm((HIDDEN, INTER)), "b1": jnp.zeros((1, INTER), jnp.float32),
            "w2": nrm((INTER, HIDDEN)), "b2": jnp.zeros((1, HIDDEN), jnp.float32),
        })
    p["layers"] = layers
    return p


def pack_params(p):
    """One-time layout plumbing: bf16 weight casts, fused-QKV stacking (with the
       attention scale folded into the q columns), per-layer weight stacks along a
       leading layer axis, and stacked per-layer prompt embeddings."""
    packed = {}
    packed["w_patch"] = p["conv_w"].reshape(HIDDEN, -1).T.astype(jnp.bfloat16)  # [CPP, H]
    packed["class_emb"] = p["class_emb"].reshape(1, HIDDEN)
    packed["pos_emb"] = p["pos_emb"]
    packed["pre_ln_g"], packed["pre_ln_b"] = p["pre_ln_g"], p["pre_ln_b"]
    packed["post_ln_g"], packed["post_ln_b"] = p["post_ln_g"], p["post_ln_b"]

    shallow = p["prompt_emb"]                                 # [1, P, PROMPT_DIM]
    if PMT_DEEP:
        packed["prompts_raw"] = jnp.concatenate(
            [shallow, p["deep_prompt_emb"]], axis=0).astype(jnp.bfloat16)  # [L, P, PD]
    else:
        packed["prompts_raw"] = shallow.astype(jnp.bfloat16)
    packed["wproj"] = p["wproj"].astype(jnp.bfloat16)
    packed["bproj"] = p["bproj"]

    layers = p["layers"]

    def stack(key, dtype=jnp.float32):
        return jnp.stack([l[key] for l in layers], axis=0).astype(dtype)

    packed["ln1_g"], packed["ln1_b"] = stack("ln1_g"), stack("ln1_b")
    # q = (Wq x + bq) * scale  ->  fold scale into Wq and bq exactly.
    packed["wqkv"] = jnp.stack(
        [jnp.concatenate([l["wq"] * ATTN_SCALE, l["wk"], l["wv"]], axis=1)
         for l in layers], axis=0).astype(jnp.bfloat16)       # [L, H, 3H]
    packed["bqkv"] = jnp.stack(
        [jnp.concatenate([l["bq"] * ATTN_SCALE, l["bk"], l["bv"]], axis=1)
         for l in layers], axis=0)                            # [L, 1, 3H]
    packed["wo"], packed["bo"] = stack("wo", jnp.bfloat16), stack("bo")
    packed["ln2_g"], packed["ln2_b"] = stack("ln2_g"), stack("ln2_b")
    packed["w1"], packed["b1"] = stack("w1", jnp.bfloat16), stack("b1")
    packed["w2"], packed["b2"] = stack("w2", jnp.bfloat16), stack("b2")
    return packed


# ------------------------------- forward pass -------------------------------
def prompted_vision_model_forward(packed, pixel_values):
    # im2col for the (bias-free) patch-embedding conv — pure layout work in XLA.
    patches = pixel_values.reshape(B, C_IN, GRID_HW, PATCH, GRID_HW, PATCH)
    patches = patches.transpose(0, 2, 4, 1, 3, 5)
    patches = patches.reshape(B, NUM_PATCHES, C_IN * PATCH * PATCH).astype(jnp.bfloat16)

    # Entire model (embeddings + pre-LN + prompt insertion + all encoder layers with
    # deep-prompt re-injection + post-LN CLS pooling) in ONE pallas_call.
    last_hidden_state, pooled = pallas_prompted_vit(patches, packed,
                                                    inject_prompts=PMT_DEEP)
    return last_hidden_state, pooled.reshape(B, HIDDEN)


if __name__ == "__main__":
    key = jax.random.PRNGKey(0)
    kp, kx = jax.random.split(key)
    params = init_params(kp)
    packed = pack_params(params)
    pixel_values = jax.random.normal(kx, (B, C_IN, IMG, IMG), jnp.float32)

    fwd = jax.jit(prompted_vision_model_forward)
    last, pooled = fwd(packed, pixel_values)
    jax.block_until_ready((last, pooled))

    assert last.shape == (B, SEQ, HIDDEN), last.shape
    assert pooled.shape == (B, HIDDEN), pooled.shape
    assert bool(jnp.all(jnp.isfinite(last))) and bool(jnp.all(jnp.isfinite(pooled)))
    print("KERNEL_OK")
</pallas_src>

<mosaic_0001>
module attributes {stable_mosaic.version = 11 : i64} {
  func.func @_vpt_vit_kernel(%arg0: i32, %arg1: i32, %arg2: memref<1x4x768xbf16, #tpu.memory_space<vmem>>, %arg3: memref<768x32xbf16, #tpu.memory_space<vmem>>, %arg4: memref<1x32xf32, #tpu.memory_space<vmem>>, %arg5: memref<5x32xf32, #tpu.memory_space<vmem>>, %arg6: memref<1x32xf32, #tpu.memory_space<vmem>>, %arg7: memref<1x32xf32, #tpu.memory_space<vmem>>, %arg8: memref<1x4x16xbf16, #tpu.memory_space<vmem>>, %arg9: memref<16x32xbf16, #tpu.memory_space<vmem>>, %arg10: memref<1x32xf32, #tpu.memory_space<vmem>>, %arg11: memref<1x1x32xf32, #tpu.memory_space<vmem>>, %arg12: memref<1x1x32xf32, #tpu.memory_space<vmem>>, %arg13: memref<1x32x96xbf16, #tpu.memory_space<vmem>>, %arg14: memref<1x1x96xf32, #tpu.memory_space<vmem>>, %arg15: memref<1x32x32xbf16, #tpu.memory_space<vmem>>, %arg16: memref<1x1x32xf32, #tpu.memory_space<vmem>>, %arg17: memref<1x1x32xf32, #tpu.memory_space<vmem>>, %arg18: memref<1x1x32xf32, #tpu.memory_space<vmem>>, %arg19: memref<1x32x64xbf16, #tpu.memory_space<vmem>>, %arg20: memref<1x1x64xf32, #tpu.memory_space<vmem>>, %arg21: memref<1x64x32xbf16, #tpu.memory_space<vmem>>, %arg22: memref<1x1x32xf32, #tpu.memory_space<vmem>>, %arg23: memref<1x32xf32, #tpu.memory_space<vmem>>, %arg24: memref<1x32xf32, #tpu.memory_space<vmem>>, %arg25: memref<1x9x32xf32, #tpu.memory_space<vmem>>, %arg26: memref<1x1x32xf32, #tpu.memory_space<vmem>>, %arg27: memref<9x32xf32, #tpu.memory_space<vmem>>) attributes {dimension_semantics = [#tpu.dimension_semantics<parallel>, #tpu.dimension_semantics<arbitrary>], iteration_bounds = array<i64: 2, 2>, scalar_prefetch = 0 : i64, scratch_operands = 1 : i64, tpu.core_type = #tpu.core_type<tc>, window_params = [{transform_indices = @transform_0, window_bounds = array<i64: 1, 4, 768>}, {pipeline_mode = #tpu.pipeline_mode<synchronous>, transform_indices = @transform_1, window_bounds = array<i64: 768, 32>}, {pipeline_mode = #tpu.pipeline_mode<synchronous>, transform_indices = @transform_2, window_bounds = array<i64: 1, 32>}, {pipeline_mode = #tpu.pipeline_mode<synchronous>, transform_indices = @transform_3, window_bounds = array<i64: 5, 32>}, {pipeline_mode = #tpu.pipeline_mode<synchronous>, transform_indices = @transform_4, window_bounds = array<i64: 1, 32>}, {pipeline_mode = #tpu.pipeline_mode<synchronous>, transform_indices = @transform_5, window_bounds = array<i64: 1, 32>}, {transform_indices = @transform_6, window_bounds = array<i64: 1, 4, 16>}, {pipeline_mode = #tpu.pipeline_mode<synchronous>, transform_indices = @transform_7, window_bounds = array<i64: 16, 32>}, {pipeline_mode = #tpu.pipeline_mode<synchronous>, transform_indices = @transform_8, window_bounds = array<i64: 1, 32>}, {transform_indices = @transform_9, window_bounds = array<i64: 1, 1, 32>}, {transform_indices = @transform_10, window_bounds = array<i64: 1, 1, 32>}, {transform_indices = @transform_11, window_bounds = array<i64: 1, 32, 96>}, {transform_indices = @transform_12, window_bounds = array<i64: 1, 1, 96>}, {transform_indices = @transform_13, window_bounds = array<i64: 1, 32, 32>}, {transform_indices = @transform_14, window_bounds = array<i64: 1, 1, 32>}, {transform_indices = @transform_15, window_bounds = array<i64: 1, 1, 32>}, {transform_indices = @transform_16, window_bounds = array<i64: 1, 1, 32>}, {transform_indices = @transform_17, window_bounds = array<i64: 1, 32, 64>}, {transform_indices = @transform_18, window_bounds = array<i64: 1, 1, 64>}, {transform_indices = @transform_19, window_bounds = array<i64: 1, 64, 32>}, {transform_indices = @transform_20, window_bounds = array<i64: 1, 1, 32>}, {pipeline_mode = #tpu.pipeline_mode<synchronous>, transform_indices = @transform_21, window_bounds = array<i64: 1, 32>}, {pipeline_mode = #tpu.pipeline_mode<synchronous>, transform_indices = @transform_22, window_bounds = array<i64: 1, 32>}, {transform_indices = @transform_23, window_bounds = array<i64: 1, 9, 32>}, {transform_indices = @transform_24, window_bounds = array<i64: 1, 1, 32>}]} {
    %c0_i32 = arith.constant 0 : i32
    %0 = arith.cmpi eq, %arg1, %c0_i32 : i32
    %1 = arith.extui %0 : i1 to i32
    %c0_i32_0 = arith.constant 0 : i32
    %2 = arith.cmpi ne, %1, %c0_i32_0 : i32
    scf.if %2 {
      %c0_62 = arith.constant 0 : index
      %c0_63 = arith.constant 0 : index
      %c0_64 = arith.constant 0 : index
      %144 = vector.load %arg2[%c0_62, %c0_63, %c0_64] : memref<1x4x768xbf16, #tpu.memory_space<vmem>>, vector<1x4x768xbf16>
      %145 = vector.shape_cast %144 : vector<1x4x768xbf16> to vector<4x768xbf16>
      %c0_65 = arith.constant 0 : index
      %c0_66 = arith.constant 0 : index
      %146 = vector.load %arg3[%c0_65, %c0_66] : memref<768x32xbf16, #tpu.memory_space<vmem>>, vector<768x32xbf16>
      %cst_67 = arith.constant dense<0.000000e+00> : vector<4x32xf32>
      %147 = tpu.matmul %145, %146, %cst_67 {dimension_numbers = #tpu.dot_dimension_numbers<[1], [0], [0], [1], [0, 0, 1, 1], [], []>} : vector<4x768xbf16>, vector<768x32xbf16>, vector<4x32xf32> -> vector<4x32xf32>
      %c0_68 = arith.constant 0 : index
      %c0_69 = arith.constant 0 : index
      %148 = vector.load %arg4[%c0_68, %c0_69] : memref<1x32xf32, #tpu.memory_space<vmem>>, vector<1x32xf32>
      %149 = tpu.concatenate %148, %147 in 0 : vector<1x32xf32>, vector<4x32xf32> -> vector<5x32xf32>
      %c0_70 = arith.constant 0 : index
      %c0_71 = arith.constant 0 : index
      %150 = vector.load %arg5[%c0_70, %c0_71] : memref<5x32xf32, #tpu.memory_space<vmem>>, vector<5x32xf32>
      %151 = arith.addf %149, %150 : vector<5x32xf32>
      %c0_72 = arith.constant 0 : index
      %c0_73 = arith.constant 0 : index
      %152 = vector.load %arg6[%c0_72, %c0_73] : memref<1x32xf32, #tpu.memory_space<vmem>>, vector<1x32xf32>
      %c0_74 = arith.constant 0 : index
      %c0_75 = arith.constant 0 : index
      %153 = vector.load %arg7[%c0_74, %c0_75] : memref<1x32xf32, #tpu.memory_space<vmem>>, vector<1x32xf32>
      %cst_76 = arith.constant dense<0.000000e+00> : vector<5xf32>
      %154 = vector.multi_reduction <add>, %151, %cst_76 [1] : vector<5x32xf32> to vector<5xf32>
      %155 = vector.shape_cast %154 : vector<5xf32> to vector<5x1xf32>
      %cst_77 = arith.constant 3.200000e+01 : f32
      %156 = vector.broadcast %cst_77 : f32 to vector<5x1xf32>
      %157 = arith.divf %155, %156 : vector<5x1xf32>
      %158 = vector.broadcast %157 : vector<5x1xf32> to vector<5x32xf32>
      %159 = arith.subf %151, %158 : vector<5x32xf32>
      %160 = arith.mulf %159, %159 : vector<5x32xf32>
      %cst_78 = arith.constant dense<0.000000e+00> : vector<5xf32>
      %161 = vector.multi_reduction <add>, %160, %cst_78 [1] : vector<5x32xf32> to vector<5xf32>
      %162 = vector.shape_cast %161 : vector<5xf32> to vector<5x1xf32>
      %cst_79 = arith.constant 3.200000e+01 : f32
      %163 = vector.broadcast %cst_79 : f32 to vector<5x1xf32>
      %164 = arith.divf %162, %163 : vector<5x1xf32>
      %165 = vector.broadcast %157 : vector<5x1xf32> to vector<5x32xf32>
      %166 = arith.subf %151, %165 : vector<5x32xf32>
      %cst_80 = arith.constant 9.99999974E-6 : f32
      %167 = vector.broadcast %cst_80 : f32 to vector<5x1xf32>
      %168 = arith.addf %164, %167 : vector<5x1xf32>
      %169 = math.rsqrt %168 : vector<5x1xf32>
      %170 = vector.broadcast %169 : vector<5x1xf32> to vector<5x32xf32>
      %171 = arith.mulf %166, %170 : vector<5x32xf32>
      %172 = vector.broadcast %152 : vector<1x32xf32> to vector<5x32xf32>
      %173 = arith.mulf %171, %172 : vector<5x32xf32>
      %174 = vector.broadcast %153 : vector<1x32xf32> to vector<5x32xf32>
      %175 = arith.addf %173, %174 : vector<5x32xf32>
      %c0_81 = arith.constant 0 : index
      %c0_82 = arith.constant 0 : index
      %c0_83 = arith.constant 0 : index
      %176 = vector.load %arg8[%c0_81, %c0_82, %c0_83] : memref<1x4x16xbf16, #tpu.memory_space<vmem>>, vector<1x4x16xbf16>
      %177 = vector.shape_cast %176 : vector<1x4x16xbf16> to vector<4x16xbf16>
      %c0_84 = arith.constant 0 : index
      %c0_85 = arith.constant 0 : index
      %178 = vector.load %arg9[%c0_84, %c0_85] : memref<16x32xbf16, #tpu.memory_space<vmem>>, vector<16x32xbf16>
      %cst_86 = arith.constant dense<0.000000e+00> : vector<4x32xf32>
      %179 = tpu.matmul %177, %178, %cst_86 {dimension_numbers = #tpu.dot_dimension_numbers<[1], [0], [0], [1], [0, 0, 1, 1], [], []>} : vector<4x16xbf16>, vector<16x32xbf16>, vector<4x32xf32> -> vector<4x32xf32>
      %c0_87 = arith.constant 0 : index
      %c0_88 = arith.constant 0 : index
      %180 = vector.load %arg10[%c0_87, %c0_88] : memref<1x32xf32, #tpu.memory_space<vmem>>, vector<1x32xf32>
      %181 = vector.broadcast %180 : vector<1x32xf32> to vector<4x32xf32>
      %182 = arith.addf %179, %181 : vector<4x32xf32>
      %183 = vector.extract_strided_slice %175 {offsets = [0, 0], sizes = [1, 32], strides = [1, 1]} : vector<5x32xf32> to vector<1x32xf32>
      %184 = vector.extract_strided_slice %175 {offsets = [1, 0], sizes = [4, 32], strides = [1, 1]} : vector<5x32xf32> to vector<4x32xf32>
      %185 = tpu.concatenate %183, %182, %184 in 0 : vector<1x32xf32>, vector<4x32xf32>, vector<4x32xf32> -> vector<9x32xf32>
      %c0_89 = arith.constant 0 : index
      %c0_90 = arith.constant 0 : index
      %186 = vector.load %arg27[%c0_89, %c0_90] : memref<9x32xf32, #tpu.memory_space<vmem>>, vector<9x32xf32>
      tpu.vector_store %arg27[%c0_89, %c0_90], %185 {strides = array<i32>} : memref<9x32xf32, #tpu.memory_space<vmem>>, vector<9x32xf32>,
    } else {
    }
    %c0_i32_1 = arith.constant 0 : i32
    %3 = arith.cmpi sgt, %arg1, %c0_i32_1 : i32
    %4 = arith.extui %3 : i1 to i32
    %c0_i32_2 = arith.constant 0 : i32
    %5 = arith.cmpi ne, %4, %c0_i32_2 : i32
    scf.if %5 {
      %c0_62 = arith.constant 0 : index
      %c0_63 = arith.constant 0 : index
      %c0_64 = arith.constant 0 : index
      %144 = vector.load %arg8[%c0_62, %c0_63, %c0_64] : memref<1x4x16xbf16, #tpu.memory_space<vmem>>, vector<1x4x16xbf16>
      %145 = vector.shape_cast %144 : vector<1x4x16xbf16> to vector<4x16xbf16>
      %c0_65 = arith.constant 0 : index
      %c0_66 = arith.constant 0 : index
      %146 = vector.load %arg9[%c0_65, %c0_66] : memref<16x32xbf16, #tpu.memory_space<vmem>>, vector<16x32xbf16>
      %cst_67 = arith.constant dense<0.000000e+00> : vector<4x32xf32>
      %147 = tpu.matmul %145, %146, %cst_67 {dimension_numbers = #tpu.dot_dimension_numbers<[1], [0], [0], [1], [0, 0, 1, 1], [], []>} : vector<4x16xbf16>, vector<16x32xbf16>, vector<4x32xf32> -> vector<4x32xf32>
      %c0_68 = arith.constant 0 : index
      %c0_69 = arith.constant 0 : index
      %148 = vector.load %arg10[%c0_68, %c0_69] : memref<1x32xf32, #tpu.memory_space<vmem>>, vector<1x32xf32>
      %149 = vector.broadcast %148 : vector<1x32xf32> to vector<4x32xf32>
      %150 = arith.addf %147, %149 : vector<4x32xf32>
      %c1 = arith.constant 1 : index
      %c0_70 = arith.constant 0 : index
      %151 = vector.load %arg27[%c1, %c0_70] : memref<9x32xf32, #tpu.memory_space<vmem>>, vector<4x32xf32>
      tpu.vector_store %arg27[%c1, %c0_70], %150 {strides = array<i32>} : memref<9x32xf32, #tpu.memory_space<vmem>>, vector<4x32xf32>,
    } else {
    }
    %c0 = arith.constant 0 : index
    %c0_3 = arith.constant 0 : index
    %6 = vector.load %arg27[%c0, %c0_3] : memref<9x32xf32, #tpu.memory_space<vmem>>, vector<9x32xf32>
    %c0_4 = arith.constant 0 : index
    %c0_5 = arith.constant 0 : index
    %c0_6 = arith.constant 0 : index
    %7 = vector.load %arg11[%c0_4, %c0_5, %c0_6] : memref<1x1x32xf32, #tpu.memory_space<vmem>>, vector<1x1x32xf32>
    %8 = vector.shape_cast %7 : vector<1x1x32xf32> to vector<1x32xf32>
    %c0_7 = arith.constant 0 : index
    %c0_8 = arith.constant 0 : index
    %c0_9 = arith.constant 0 : index
    %9 = vector.load %arg12[%c0_7, %c0_8, %c0_9] : memref<1x1x32xf32, #tpu.memory_space<vmem>>, vector<1x1x32xf32>
    %10 = vector.shape_cast %9 : vector<1x1x32xf32> to vector<1x32xf32>
    %cst = arith.constant dense<0.000000e+00> : vector<9xf32>
    %11 = vector.multi_reduction <add>, %6, %cst [1] : vector<9x32xf32> to vector<9xf32>
    %12 = vector.shape_cast %11 : vector<9xf32> to vector<9x1xf32>
    %cst_10 = arith.constant 3.200000e+01 : f32
    %13 = vector.broadcast %cst_10 : f32 to vector<9x1xf32>
    %14 = arith.divf %12, %13 : vector<9x1xf32>
    %15 = vector.broadcast %14 : vector<9x1xf32> to vector<9x32xf32>
    %16 = arith.subf %6, %15 : vector<9x32xf32>
    %17 = arith.mulf %16, %16 : vector<9x32xf32>
    %cst_11 = arith.constant dense<0.000000e+00> : vector<9xf32>
    %18 = vector.multi_reduction <add>, %17, %cst_11 [1] : vector<9x32xf32> to vector<9xf32>
    %19 = vector.shape_cast %18 : vector<9xf32> to vector<9x1xf32>
    %cst_12 = arith.constant 3.200000e+01 : f32
    %20 = vector.broadcast %cst_12 : f32 to vector<9x1xf32>
    %21 = arith.divf %19, %20 : vector<9x1xf32>
    %22 = vector.broadcast %14 : vector<9x1xf32> to vector<9x32xf32>
    %23 = arith.subf %6, %22 : vector<9x32xf32>
    %cst_13 = arith.constant 9.99999974E-6 : f32
    %24 = vector.broadcast %cst_13 : f32 to vector<9x1xf32>
    %25 = arith.addf %21, %24 : vector<9x1xf32>
    %26 = math.rsqrt %25 : vector<9x1xf32>
    %27 = vector.broadcast %26 : vector<9x1xf32> to vector<9x32xf32>
    %28 = arith.mulf %23, %27 : vector<9x32xf32>
    %29 = vector.broadcast %8 : vector<1x32xf32> to vector<9x32xf32>
    %30 = arith.mulf %28, %29 : vector<9x32xf32>
    %31 = vector.broadcast %10 : vector<1x32xf32> to vector<9x32xf32>
    %32 = arith.addf %30, %31 : vector<9x32xf32>
    %33 = arith.truncf %32 : vector<9x32xf32> to vector<9x32xbf16>
    %c0_14 = arith.constant 0 : index
    %c0_15 = arith.constant 0 : index
    %c0_16 = arith.constant 0 : index
    %34 = vector.load %arg13[%c0_14, %c0_15, %c0_16] : memref<1x32x96xbf16, #tpu.memory_space<vmem>>, vector<1x32x96xbf16>
    %35 = vector.shape_cast %34 : vector<1x32x96xbf16> to vector<32x96xbf16>
    %cst_17 = arith.constant dense<0.000000e+00> : vector<9x96xf32>
    %36 = tpu.matmul %33, %35, %cst_17 {dimension_numbers = #tpu.dot_dimension_numbers<[1], [0], [0], [1], [0, 0, 1, 1], [], []>} : vector<9x32xbf16>, vector<32x96xbf16>, vector<9x96xf32> -> vector<9x96xf32>
    %c0_18 = arith.constant 0 : index
    %c0_19 = arith.constant 0 : index
    %c0_20 = arith.constant 0 : index
    %37 = vector.load %arg14[%c0_18, %c0_19, %c0_20] : memref<1x1x96xf32, #tpu.memory_space<vmem>>, vector<1x1x96xf32>
    %38 = vector.shape_cast %37 : vector<1x1x96xf32> to vector<1x96xf32>
    %39 = vector.broadcast %38 : vector<1x96xf32> to vector<9x96xf32>
    %40 = arith.addf %36, %39 : vector<9x96xf32>
    %41 = vector.extract_strided_slice %40 {offsets = [0, 0], sizes = [9, 32], strides = [1, 1]} : vector<9x96xf32> to vector<9x32xf32>
    %42 = vector.extract_strided_slice %41 {offsets = [0, 0], sizes = [9, 16], strides = [1, 1]} : vector<9x32xf32> to vector<9x16xf32>
    %43 = vector.extract_strided_slice %41 {offsets = [0, 16], sizes = [9, 16], strides = [1, 1]} : vector<9x32xf32> to vector<9x16xf32>
    %44 = vector.shape_cast %42 : vector<9x16xf32> to vector<1x9x16xf32>
    %45 = vector.shape_cast %43 : vector<9x16xf32> to vector<1x9x16xf32>
    %46 = tpu.concatenate %44, %45 in 0 : vector<1x9x16xf32>, vector<1x9x16xf32> -> vector<2x9x16xf32>
    %47 = arith.truncf %46 : vector<2x9x16xf32> to vector<2x9x16xbf16>
    %48 = vector.extract_strided_slice %40 {offsets = [0, 32], sizes = [9, 32], strides = [1, 1]} : vector<9x96xf32> to vector<9x32xf32>
    %49 = vector.extract_strided_slice %48 {offsets = [0, 0], sizes = [9, 16], strides = [1, 1]} : vector<9x32xf32> to vector<9x16xf32>
    %50 = vector.extract_strided_slice %48 {offsets = [0, 16], sizes = [9, 16], strides = [1, 1]} : vector<9x32xf32> to vector<9x16xf32>
    %51 = vector.shape_cast %49 : vector<9x16xf32> to vector<1x9x16xf32>
    %52 = vector.shape_cast %50 : vector<9x16xf32> to vector<1x9x16xf32>
    %53 = tpu.concatenate %51, %52 in 0 : vector<1x9x16xf32>, vector<1x9x16xf32> -> vector<2x9x16xf32>
    %54 = arith.truncf %53 : vector<2x9x16xf32> to vector<2x9x16xbf16>
    %55 = vector.extract_strided_slice %40 {offsets = [0, 64], sizes = [9, 32], strides = [1, 1]} : vector<9x96xf32> to vector<9x32xf32>
    %56 = vector.extract_strided_slice %55 {offsets = [0, 0], sizes = [9, 16], strides = [1, 1]} : vector<9x32xf32> to vector<9x16xf32>
    %57 = vector.extract_strided_slice %55 {offsets = [0, 16], sizes = [9, 16], strides = [1, 1]} : vector<9x32xf32> to vector<9x16xf32>
    %58 = vector.shape_cast %56 : vector<9x16xf32> to vector<1x9x16xf32>
    %59 = vector.shape_cast %57 : vector<9x16xf32> to vector<1x9x16xf32>
    %60 = tpu.concatenate %58, %59 in 0 : vector<1x9x16xf32>, vector<1x9x16xf32> -> vector<2x9x16xf32>
    %61 = arith.truncf %60 : vector<2x9x16xf32> to vector<2x9x16xbf16>
    "tpu.trace_start"() <{level = 10 : i32, message = "hqd,hkd->hqk"}> : () -> ()
    %cst_21 = arith.constant dense<0.000000e+00> : vector<2x9x9xf32>
    %62 = tpu.matmul %47, %54, %cst_21 {dimension_numbers = #tpu.dot_dimension_numbers<[2], [2], [1], [1], [0, 0, 0, 1, 1, 1], [0], [0]>} : vector<2x9x16xbf16>, vector<2x9x16xbf16>, vector<2x9x9xf32> -> vector<2x9x9xf32>
    "tpu.trace_stop"() : () -> ()
    %cst_22 = arith.constant dense<0xFF800000> : vector<2x9xf32>
    %63 = vector.multi_reduction <maximumf>, %62, %cst_22 [2] : vector<2x9x9xf32> to vector<2x9xf32>
    %64 = vector.shape_cast %63 : vector<2x9xf32> to vector<2x9x1xf32>
    %65 = vector.broadcast %64 : vector<2x9x1xf32> to vector<2x9x9xf32>
    %66 = arith.subf %62, %65 : vector<2x9x9xf32>
    %67 = math.exp %66 : vector<2x9x9xf32>
    %cst_23 = arith.constant dense<0.000000e+00> : vector<2x9xf32>
    %68 = vector.multi_reduction <add>, %67, %cst_23 [2] : vector<2x9x9xf32> to vector<2x9xf32>
    %69 = vector.shape_cast %68 : vector<2x9xf32> to vector<2x9x1xf32>
    %70 = tpu.reciprocal %69 {approx = true} : vector<2x9x1xf32> -> vector<2x9x1xf32>
    %71 = vector.broadcast %70 : vector<2x9x1xf32> to vector<2x9x9xf32>
    %72 = arith.mulf %67, %71 : vector<2x9x9xf32>
    %73 = arith.truncf %72 : vector<2x9x9xf32> to vector<2x9x9xbf16>
    "tpu.trace_start"() <{level = 10 : i32, message = "hqk,hkd->hqd"}> : () -> ()
    %cst_24 = arith.constant dense<0.000000e+00> : vector<2x9x16xf32>
    %74 = tpu.matmul %73, %61, %cst_24 {dimension_numbers = #tpu.dot_dimension_numbers<[2], [1], [1], [2], [0, 0, 0, 1, 1, 2], [0], [0]>} : vector<2x9x9xbf16>, vector<2x9x16xbf16>, vector<2x9x16xf32> -> vector<2x9x16xf32>
    "tpu.trace_stop"() : () -> ()
    %75 = vector.extract_strided_slice %74 {offsets = [0, 0, 0], sizes = [1, 9, 16], strides = [1, 1, 1]} : vector<2x9x16xf32> to vector<1x9x16xf32>
    %76 = vector.shape_cast %75 : vector<1x9x16xf32> to vector<9x16xf32>
    %77 = vector.extract_strided_slice %74 {offsets = [1, 0, 0], sizes = [1, 9, 16], strides = [1, 1, 1]} : vector<2x9x16xf32> to vector<1x9x16xf32>
    %78 = vector.shape_cast %77 : vector<1x9x16xf32> to vector<9x16xf32>
    %79 = tpu.concatenate %76, %78 in 1 : vector<9x16xf32>, vector<9x16xf32> -> vector<9x32xf32>
    %80 = arith.truncf %79 : vector<9x32xf32> to vector<9x32xbf16>
    %c0_25 = arith.constant 0 : index
    %c0_26 = arith.constant 0 : index
    %c0_27 = arith.constant 0 : index
    %81 = vector.load %arg15[%c0_25, %c0_26, %c0_27] : memref<1x32x32xbf16, #tpu.memory_space<vmem>>, vector<1x32x32xbf16>
    %82 = vector.shape_cast %81 : vector<1x32x32xbf16> to vector<32x32xbf16>
    %cst_28 = arith.constant dense<0.000000e+00> : vector<9x32xf32>
    %83 = tpu.matmul %80, %82, %cst_28 {dimension_numbers = #tpu.dot_dimension_numbers<[1], [0], [0], [1], [0, 0, 1, 1], [], []>} : vector<9x32xbf16>, vector<32x32xbf16>, vector<9x32xf32> -> vector<9x32xf32>
    %c0_29 = arith.constant 0 : index
    %c0_30 = arith.constant 0 : index
    %c0_31 = arith.constant 0 : index
    %84 = vector.load %arg16[%c0_29, %c0_30, %c0_31] : memref<1x1x32xf32, #tpu.memory_space<vmem>>, vector<1x1x32xf32>
    %85 = vector.shape_cast %84 : vector<1x1x32xf32> to vector<1x32xf32>
    %86 = vector.broadcast %85 : vector<1x32xf32> to vector<9x32xf32>
    %87 = arith.addf %83, %86 : vector<9x32xf32>
    %88 = arith.addf %6, %87 : vector<9x32xf32>
    %c0_32 = arith.constant 0 : index
    %c0_33 = arith.constant 0 : index
    %c0_34 = arith.constant 0 : index
    %89 = vector.load %arg17[%c0_32, %c0_33, %c0_34] : memref<1x1x32xf32, #tpu.memory_space<vmem>>, vector<1x1x32xf32>
    %90 = vector.shape_cast %89 : vector<1x1x32xf32> to vector<1x32xf32>
    %c0_35 = arith.constant 0 : index
    %c0_36 = arith.constant 0 : index
    %c0_37 = arith.constant 0 : index
    %91 = vector.load %arg18[%c0_35, %c0_36, %c0_37] : memref<1x1x32xf32, #tpu.memory_space<vmem>>, vector<1x1x32xf32>
    %92 = vector.shape_cast %91 : vector<1x1x32xf32> to vector<1x32xf32>
    %cst_38 = arith.constant dense<0.000000e+00> : vector<9xf32>
    %93 = vector.multi_reduction <add>, %88, %cst_38 [1] : vector<9x32xf32> to vector<9xf32>
    %94 = vector.shape_cast %93 : vector<9xf32> to vector<9x1xf32>
    %cst_39 = arith.constant 3.200000e+01 : f32
    %95 = vector.broadcast %cst_39 : f32 to vector<9x1xf32>
    %96 = arith.divf %94, %95 : vector<9x1xf32>
    %97 = vector.broadcast %96 : vector<9x1xf32> to vector<9x32xf32>
    %98 = arith.subf %88, %97 : vector<9x32xf32>
    %99 = arith.mulf %98, %98 : vector<9x32xf32>
    %cst_40 = arith.constant dense<0.000000e+00> : vector<9xf32>
    %100 = vector.multi_reduction <add>, %99, %cst_40 [1] : vector<9x32xf32> to vector<9xf32>
    %101 = vector.shape_cast %100 : vector<9xf32> to vector<9x1xf32>
    %cst_41 = arith.constant 3.200000e+01 : f32
    %102 = vector.broadcast %cst_41 : f32 to vector<9x1xf32>
    %103 = arith.divf %101, %102 : vector<9x1xf32>
    %104 = vector.broadcast %96 : vector<9x1xf32> to vector<9x32xf32>
    %105 = arith.subf %88, %104 : vector<9x32xf32>
    %cst_42 = arith.constant 9.99999974E-6 : f32
    %106 = vector.broadcast %cst_42 : f32 to vector<9x1xf32>
    %107 = arith.addf %103, %106 : vector<9x1xf32>
    %108 = math.rsqrt %107 : vector<9x1xf32>
    %109 = vector.broadcast %108 : vector<9x1xf32> to vector<9x32xf32>
    %110 = arith.mulf %105, %109 : vector<9x32xf32>
    %111 = vector.broadcast %90 : vector<1x32xf32> to vector<9x32xf32>
    %112 = arith.mulf %110, %111 : vector<9x32xf32>
    %113 = vector.broadcast %92 : vector<1x32xf32> to vector<9x32xf32>
    %114 = arith.addf %112, %113 : vector<9x32xf32>
    %115 = arith.truncf %114 : vector<9x32xf32> to vector<9x32xbf16>
    %c0_43 = arith.constant 0 : index
    %c0_44 = arith.constant 0 : index
    %c0_45 = arith.constant 0 : index
    %116 = vector.load %arg19[%c0_43, %c0_44, %c0_45] : memref<1x32x64xbf16, #tpu.memory_space<vmem>>, vector<1x32x64xbf16>
    %117 = vector.shape_cast %116 : vector<1x32x64xbf16> to vector<32x64xbf16>
    %cst_46 = arith.constant dense<0.000000e+00> : vector<9x64xf32>
    %118 = tpu.matmul %115, %117, %cst_46 {dimension_numbers = #tpu.dot_dimension_numbers<[1], [0], [0], [1], [0, 0, 1, 1], [], []>} : vector<9x32xbf16>, vector<32x64xbf16>, vector<9x64xf32> -> vector<9x64xf32>
    %c0_47 = arith.constant 0 : index
    %c0_48 = arith.constant 0 : index
    %c0_49 = arith.constant 0 : index
    %119 = vector.load %arg20[%c0_47, %c0_48, %c0_49] : memref<1x1x64xf32, #tpu.memory_space<vmem>>, vector<1x1x64xf32>
    %120 = vector.shape_cast %119 : vector<1x1x64xf32> to vector<1x64xf32>
    %121 = vector.broadcast %120 : vector<1x64xf32> to vector<9x64xf32>
    %122 = arith.addf %118, %121 : vector<9x64xf32>
    %cst_50 = arith.constant 1.702000e+00 : f32
    %123 = vector.broadcast %cst_50 : f32 to vector<9x64xf32>
    %124 = arith.mulf %123, %122 : vector<9x64xf32>
    %125 = arith.negf %124 : vector<9x64xf32>
    %126 = math.exp %125 : vector<9x64xf32>
    %cst_51 = arith.constant 1.000000e+00 : f32
    %127 = vector.broadcast %cst_51 : f32 to vector<9x64xf32>
    %128 = arith.addf %127, %126 : vector<9x64xf32>
    %129 = arith.divf %127, %128 : vector<9x64xf32>
    %130 = arith.mulf %122, %129 : vector<9x64xf32>
    %131 = arith.truncf %130 : vector<9x64xf32> to vector<9x64xbf16>
    %c0_52 = arith.constant 0 : index
    %c0_53 = arith.constant 0 : index
    %c0_54 = arith.constant 0 : index
    %132 = vector.load %arg21[%c0_52, %c0_53, %c0_54] : memref<1x64x32xbf16, #tpu.memory_space<vmem>>, vector<1x64x32xbf16>
    %133 = vector.shape_cast %132 : vector<1x64x32xbf16> to vector<64x32xbf16>
    %cst_55 = arith.constant dense<0.000000e+00> : vector<9x32xf32>
    %134 = tpu.matmul %131, %133, %cst_55 {dimension_numbers = #tpu.dot_dimension_numbers<[1], [0], [0], [1], [0, 0, 1, 1], [], []>} : vector<9x64xbf16>, vector<64x32xbf16>, vector<9x32xf32> -> vector<9x32xf32>
    %c0_56 = arith.constant 0 : index
    %c0_57 = arith.constant 0 : index
    %c0_58 = arith.constant 0 : index
    %135 = vector.load %arg22[%c0_56, %c0_57, %c0_58] : memref<1x1x32xf32, #tpu.memory_space<vmem>>, vector<1x1x32xf32>
    %136 = vector.shape_cast %135 : vector<1x1x32xf32> to vector<1x32xf32>
    %137 = vector.broadcast %136 : vector<1x32xf32> to vector<9x32xf32>
    %138 = arith.addf %134, %137 : vector<9x32xf32>
    %139 = arith.addf %88, %138 : vector<9x32xf32>
    %c0_59 = arith.constant 0 : index
    %c0_60 = arith.constant 0 : index
    %140 = vector.load %arg27[%c0_59, %c0_60] : memref<9x32xf32, #tpu.memory_space<vmem>>, vector<9x32xf32>
    tpu.vector_store %arg27[%c0_59, %c0_60], %139 {strides = array<i32>} : memref<9x32xf32, #tpu.memory_space<vmem>>, vector<9x32xf32>,
    %c1_i32 = arith.constant 1 : i32
    %141 = arith.cmpi eq, %arg1, %c1_i32 : i32
    %142 = arith.extui %141 : i1 to i32
    %c0_i32_61 = arith.constant 0 : i32
    %143 = arith.cmpi ne, %142, %c0_i32_61 : i32
    scf.if %143 {
      %c0_62 = arith.constant 0 : index
      %c0_63 = arith.constant 0 : index
      %c0_64 = arith.constant 0 : index
      %144 = vector.load %arg25[%c0_62, %c0_63, %c0_64] : memref<1x9x32xf32, #tpu.memory_space<vmem>>, vector<1x9x32xf32>
      %145 = vector.shape_cast %144 : vector<1x9x32xf32> to vector<9x32xf32>
      %146 = vector.shape_cast %139 : vector<9x32xf32> to vector<1x9x32xf32>
      tpu.vector_store %arg25[%c0_62, %c0_63, %c0_64], %146 {strides = array<i32>} : memref<1x9x32xf32, #tpu.memory_space<vmem>>, vector<1x9x32xf32>,
      %147 = vector.extract_strided_slice %139 {offsets = [0, 0], sizes = [1, 32], strides = [1, 1]} : vector<9x32xf32> to vector<1x32xf32>
      %c0_65 = arith.constant 0 : index
      %c0_66 = arith.constant 0 : index
      %148 = vector.load %arg23[%c0_65, %c0_66] : memref<1x32xf32, #tpu.memory_space<vmem>>, vector<1x32xf32>
      %c0_67 = arith.constant 0 : index
      %c0_68 = arith.constant 0 : index
      %149 = vector.load %arg24[%c0_67, %c0_68] : memref<1x32xf32, #tpu.memory_space<vmem>>, vector<1x32xf32>
      %cst_69 = arith.constant dense<0.000000e+00> : vector<1xf32>
      %150 = vector.multi_reduction <add>, %147, %cst_69 [1] : vector<1x32xf32> to vector<1xf32>
      %151 = vector.shape_cast %150 : vector<1xf32> to vector<1x1xf32>
      %cst_70 = arith.constant 3.200000e+01 : f32
      %152 = vector.broadcast %cst_70 : f32 to vector<1x1xf32>
      %153 = arith.divf %151, %152 : vector<1x1xf32>
      %154 = vector.broadcast %153 : vector<1x1xf32> to vector<1x32xf32>
      %155 = arith.subf %147, %154 : vector<1x32xf32>
      %156 = arith.mulf %155, %155 : vector<1x32xf32>
      %cst_71 = arith.constant dense<0.000000e+00> : vector<1xf32>
      %157 = vector.multi_reduction <add>, %156, %cst_71 [1] : vector<1x32xf32> to vector<1xf32>
      %158 = vector.shape_cast %157 : vector<1xf32> to vector<1x1xf32>
      %cst_72 = arith.constant 3.200000e+01 : f32
      %159 = vector.broadcast %cst_72 : f32 to vector<1x1xf32>
      %160 = arith.divf %158, %159 : vector<1x1xf32>
      %161 = vector.broadcast %153 : vector<1x1xf32> to vector<1x32xf32>
      %162 = arith.subf %147, %161 : vector<1x32xf32>
      %cst_73 = arith.constant 9.99999974E-6 : f32
      %163 = vector.broadcast %cst_73 : f32 to vector<1x1xf32>
      %164 = arith.addf %160, %163 : vector<1x1xf32>
      %165 = math.rsqrt %164 : vector<1x1xf32>
      %166 = vector.broadcast %165 : vector<1x1xf32> to vector<1x32xf32>
      %167 = arith.mulf %162, %166 : vector<1x32xf32>
      %168 = arith.mulf %167, %148 : vector<1x32xf32>
      %169 = arith.addf %168, %149 : vector<1x32xf32>
      %c0_74 = arith.constant 0 : index
      %c0_75 = arith.constant 0 : index
      %c0_76 = arith.constant 0 : index
      %170 = vector.load %arg26[%c0_74, %c0_75, %c0_76] : memref<1x1x32xf32, #tpu.memory_space<vmem>>, vector<1x1x32xf32>
      %171 = vector.shape_cast %170 : vector<1x1x32xf32> to vector<1x32xf32>
      %172 = vector.shape_cast %169 : vector<1x32xf32> to vector<1x1x32xf32>
      tpu.vector_store %arg26[%c0_74, %c0_75, %c0_76], %172 {strides = array<i32>} : memref<1x1x32xf32, #tpu.memory_space<vmem>>, vector<1x1x32xf32>,
    } else {
    }
    return
  }
  func.func @transform_0(%arg0: i32, %arg1: i32) -> (i32, i32, i32) {
    %c0_i32 = arith.constant 0 : i32
    %c0_i32_0 = arith.constant 0 : i32
    %c0_i32_1 = arith.constant 0 : i32
    return %arg0, %c0_i32, %c0_i32_0 : i32, i32, i32
  }
  func.func @transform_1(%arg0: i32, %arg1: i32) -> (i32, i32) {
    %c0_i32 = arith.constant 0 : i32
    %c0_i32_0 = arith.constant 0 : i32
    %c0_i32_1 = arith.constant 0 : i32
    return %c0_i32, %c0_i32_0 : i32, i32
  }
  func.func @transform_2(%arg0: i32, %arg1: i32) -> (i32, i32) {
    %c0_i32 = arith.constant 0 : i32
    %c0_i32_0 = arith.constant 0 : i32
    %c0_i32_1 = arith.constant 0 : i32
    return %c0_i32, %c0_i32_0 : i32, i32
  }
  func.func @transform_3(%arg0: i32, %arg1: i32) -> (i32, i32) {
    %c0_i32 = arith.constant 0 : i32
    %c0_i32_0 = arith.constant 0 : i32
    %c0_i32_1 = arith.constant 0 : i32
    return %c0_i32, %c0_i32_0 : i32, i32
  }
  func.func @transform_4(%arg0: i32, %arg1: i32) -> (i32, i32) {
    %c0_i32 = arith.constant 0 : i32
    %c0_i32_0 = arith.constant 0 : i32
    %c0_i32_1 = arith.constant 0 : i32
    return %c0_i32, %c0_i32_0 : i32, i32
  }
  func.func @transform_5(%arg0: i32, %arg1: i32) -> (i32, i32) {
    %c0_i32 = arith.constant 0 : i32
    %c0_i32_0 = arith.constant 0 : i32
    %c0_i32_1 = arith.constant 0 : i32
    return %c0_i32, %c0_i32_0 : i32, i32
  }
  func.func @transform_6(%arg0: i32, %arg1: i32) -> (i32, i32, i32) {
    %c0_i32 = arith.constant 0 : i32
    %c0_i32_0 = arith.constant 0 : i32
    %c0_i32_1 = arith.constant 0 : i32
    return %arg1, %c0_i32, %c0_i32_0 : i32, i32, i32
  }
  func.func @transform_7(%arg0: i32, %arg1: i32) -> (i32, i32) {
    %c0_i32 = arith.constant 0 : i32
    %c0_i32_0 = arith.constant 0 : i32
    %c0_i32_1 = arith.constant 0 : i32
    return %c0_i32, %c0_i32_0 : i32, i32
  }
  func.func @transform_8(%arg0: i32, %arg1: i32) -> (i32, i32) {
    %c0_i32 = arith.constant 0 : i32
    %c0_i32_0 = arith.constant 0 : i32
    %c0_i32_1 = arith.constant 0 : i32
    return %c0_i32, %c0_i32_0 : i32, i32
  }
  func.func @transform_9(%arg0: i32, %arg1: i32) -> (i32, i32, i32) {
    %c0_i32 = arith.constant 0 : i32
    %c0_i32_0 = arith.constant 0 : i32
    %c0_i32_1 = arith.constant 0 : i32
    return %arg1, %c0_i32, %c0_i32_0 : i32, i32, i32
  }
  func.func @transform_10(%arg0: i32, %arg1: i32) -> (i32, i32, i32) {
    %c0_i32 = arith.constant 0 : i32
    %c0_i32_0 = arith.constant 0 : i32
    %c0_i32_1 = arith.constant 0 : i32
    return %arg1, %c0_i32, %c0_i32_0 : i32, i32, i32
  }
  func.func @transform_11(%arg0: i32, %arg1: i32) -> (i32, i32, i32) {
    %c0_i32 = arith.constant 0 : i32
    %c0_i32_0 = arith.constant 0 : i32
    %c0_i32_1 = arith.constant 0 : i32
    return %arg1, %c0_i32, %c0_i32_0 : i32, i32, i32
  }
  func.func @transform_12(%arg0: i32, %arg1: i32) -> (i32, i32, i32) {
    %c0_i32 = arith.constant 0 : i32
    %c0_i32_0 = arith.constant 0 : i32
    %c0_i32_1 = arith.constant 0 : i32
    return %arg1, %c0_i32, %c0_i32_0 : i32, i32, i32
  }
  func.func @transform_13(%arg0: i32, %arg1: i32) -> (i32, i32, i32) {
    %c0_i32 = arith.constant 0 : i32
    %c0_i32_0 = arith.constant 0 : i32
    %c0_i32_1 = arith.constant 0 : i32
    return %arg1, %c0_i32, %c0_i32_0 : i32, i32, i32
  }
  func.func @transform_14(%arg0: i32, %arg1: i32) -> (i32, i32, i32) {
    %c0_i32 = arith.constant 0 : i32
    %c0_i32_0 = arith.constant 0 : i32
    %c0_i32_1 = arith.constant 0 : i32
    return %arg1, %c0_i32, %c0_i32_0 : i32, i32, i32
  }
  func.func @transform_15(%arg0: i32, %arg1: i32) -> (i32, i32, i32) {
    %c0_i32 = arith.constant 0 : i32
    %c0_i32_0 = arith.constant 0 : i32
    %c0_i32_1 = arith.constant 0 : i32
    return %arg1, %c0_i32, %c0_i32_0 : i32, i32, i32
  }
  func.func @transform_16(%arg0: i32, %arg1: i32) -> (i32, i32, i32) {
    %c0_i32 = arith.constant 0 : i32
    %c0_i32_0 = arith.constant 0 : i32
    %c0_i32_1 = arith.constant 0 : i32
    return %arg1, %c0_i32, %c0_i32_0 : i32, i32, i32
  }
  func.func @transform_17(%arg0: i32, %arg1: i32) -> (i32, i32, i32) {
    %c0_i32 = arith.constant 0 : i32
    %c0_i32_0 = arith.constant 0 : i32
    %c0_i32_1 = arith.constant 0 : i32
    return %arg1, %c0_i32, %c0_i32_0 : i32, i32, i32
  }
  func.func @transform_18(%arg0: i32, %arg1: i32) -> (i32, i32, i32) {
    %c0_i32 = arith.constant 0 : i32
    %c0_i32_0 = arith.constant 0 : i32
    %c0_i32_1 = arith.constant 0 : i32
    return %arg1, %c0_i32, %c0_i32_0 : i32, i32, i32
  }
  func.func @transform_19(%arg0: i32, %arg1: i32) -> (i32, i32, i32) {
    %c0_i32 = arith.constant 0 : i32
    %c0_i32_0 = arith.constant 0 : i32
    %c0_i32_1 = arith.constant 0 : i32
    return %arg1, %c0_i32, %c0_i32_0 : i32, i32, i32
  }
  func.func @transform_20(%arg0: i32, %arg1: i32) -> (i32, i32, i32) {
    %c0_i32 = arith.constant 0 : i32
    %c0_i32_0 = arith.constant 0 : i32
    %c0_i32_1 = arith.constant 0 : i32
    return %arg1, %c0_i32, %c0_i32_0 : i32, i32, i32
  }
  func.func @transform_21(%arg0: i32, %arg1: i32) -> (i32, i32) {
    %c0_i32 = arith.constant 0 : i32
    %c0_i32_0 = arith.constant 0 : i32
    %c0_i32_1 = arith.constant 0 : i32
    return %c0_i32, %c0_i32_0 : i32, i32
  }
  func.func @transform_22(%arg0: i32, %arg1: i32) -> (i32, i32) {
    %c0_i32 = arith.constant 0 : i32
    %c0_i32_0 = arith.constant 0 : i32
    %c0_i32_1 = arith.constant 0 : i32
    return %c0_i32, %c0_i32_0 : i32, i32
  }
  func.func @transform_23(%arg0: i32, %arg1: i32) -> (i32, i32, i32) {
    %c0_i32 = arith.constant 0 : i32
    %c0_i32_0 = arith.constant 0 : i32
    %c0_i32_1 = arith.constant 0 : i32
    return %arg0, %c0_i32, %c0_i32_0 : i32, i32, i32
  }
  func.func @transform_24(%arg0: i32, %arg1: i32) -> (i32, i32, i32) {
    %c0_i32 = arith.constant 0 : i32
    %c0_i32_0 = arith.constant 0 : i32
    %c0_i32_1 = arith.constant 0 : i32
    return %arg0, %c0_i32, %c0_i32_0 : i32, i32, i32
  }
}

</mosaic_0001>

<bundles_post_ra>
// kernel: prompted_vision_model_forward.1
= control target key start
LH: loop header
LB: loop body
LE: loop exit
PB: predicated region body
PF: predicated region fallthrough
CT: control target
= control target key end

     0   :  { %s3861_s0 = inlined_call_operand.vmem [shape: bf16[2,4,768], index: 0, kind: input, shape index: {}]   ;;  %s3862_s1 = inlined_call_operand.vmem [shape: bf16[768,32], index: 1, kind: input, shape index: {}]   ;;  %s3863_s2 = inlined_call_operand.vmem [shape: f32[1,32], index: 2, kind: input, shape index: {}]   ;;  %s3864_s3 = inlined_call_operand.vmem [shape: f32[5,32], index: 3, kind: input, shape index: {}]   ;;  %s3865_s4 = inlined_call_operand.vmem [shape: f32[1,32], index: 4, kind: input, shape index: {}]   ;;  %s3866_s5 = inlined_call_operand.vmem [shape: f32[1,32], index: 5, kind: input, shape index: {}]   ;;  %s3867_s6 = inlined_call_operand.vmem [shape: bf16[2,4,16], index: 6, kind: input, shape index: {}]   ;;  %s3868_s7 = inlined_call_operand.vmem [shape: bf16[16,32], index: 7, kind: input, shape index: {}]   ;;  %s3869_s8 = inlined_call_operand.vmem [shape: f32[1,32], index: 8, kind: input, shape index: {}]   ;;  %s3870_s9 = inlined_call_operand.vmem [shape: f32[2,1,32], index: 9, kind: input, shape index: {}]   ;;  %s3871_s10 = inlined_call_operand.vmem [shape: f32[2,1,32], index: 10, kind: input, shape index: {}]   ;;  %s3872_s11 = inlined_call_operand.vmem [shape: bf16[2,32,96], index: 11, kind: input, shape index: {}]   ;;  %s3873_s12 = inlined_call_operand.vmem [shape: f32[2,1,96], index: 12, kind: input, shape index: {}]   ;;  %s3874_s13 = inlined_call_operand.vmem [shape: bf16[2,32,32], index: 13, kind: input, shape index: {}]   ;;  %s3875_s14 = inlined_call_operand.vmem [shape: f32[2,1,32], index: 14, kind: input, shape index: {}]   ;;  %s3876_s15 = inlined_call_operand.vmem [shape: f32[2,1,32], index: 15, kind: input, shape index: {}]   ;;  %s3877_s16 = inlined_call_operand.vmem [shape: f32[2,1,32], index: 16, kind: input, shape index: {}]   ;;  %s3878_s17 = inlined_call_operand.vmem [shape: bf16[2,32,64], index: 17, kind: input, shape index: {}]   ;;  %s3879_s18 = inlined_call_operand.vmem [shape: f32[2,1,64], index: 18, kind: input, shape index: {}]   ;;  %s3880_s19 = inlined_call_operand.vmem [shape: bf16[2,64,32], index: 19, kind: input, shape index: {}]   ;;  %s3881_s20 = inlined_call_operand.vmem [shape: f32[2,1,32], index: 20, kind: input, shape index: {}]   ;;  %s3882_s21 = inlined_call_operand.vmem [shape: f32[1,32], index: 21, kind: input, shape index: {}]   ;;  %s3883_s22 = inlined_call_operand.vmem [shape: f32[1,32], index: 22, kind: input, shape index: {}]   ;;  %s3884_s23 = inlined_call_operand.vmem [shape: f32[2,9,32], index: 23, kind: output, shape index: {0}]   ;;  %s3885_s24 = inlined_call_operand.hbm [shape: f32[2,1,32], index: 24, kind: output, shape index: {1}]  }
   0x1   :  { %3901 = sst [smem:[#allocation19_spill]] %s3861_s0 }
   0x2   :  { %3902 = sst [smem:[#allocation20_spill]] %s3862_s1 }
   0x3   :  { %3903 = sst [smem:[#allocation21_spill]] %s3863_s2 }
   0x4   :  { %3904 = sst [smem:[#allocation22_spill]] %s3864_s3 }
   0x5   :  { %3905 = sst [smem:[#allocation23_spill]] %s3865_s4 }
   0x6   :  { %3906 = sst [smem:[#allocation24_spill]] %s3866_s5 }
   0x7   :  { %3907 = sst [smem:[#allocation25_spill]] %s3867_s6 }
   0x8   :  { %3908 = sst [smem:[#allocation26_spill]] %s3868_s7 }
   0x9   :  { %3909 = sst [smem:[#allocation27_spill]] %s3869_s8 }
   0xa   :  { %3910 = sst [smem:[#allocation28_spill]] %s3872_s11 }
   0xb   :  { %3911 = sst [smem:[#allocation29_spill]] %s3874_s13 }
   0xc   :  { %3912 = sst [smem:[#allocation30_spill]] %s3875_s14 }
   0xd   :  { %3913 = sst [smem:[#allocation31_spill]] %s3876_s15 }
   0xe   :  { %3914 = sst [smem:[#allocation32_spill]] %s3879_s18 }
   0xf   :  { %3915 = sst [smem:[#allocation33_spill]] %s3880_s19 }
  0x10   :  { %3916 = sst [smem:[#allocation34_spill]] %s3881_s20 }
  0x11   :  { %3917 = sst [smem:[#allocation35_spill]] %s3882_s21 }
  0x12   :  { %3918 = sst [smem:[#allocation36_spill]] %s3883_s22 }
  0x13   :  { %3919 = sst [smem:[#allocation37_spill]] %s3884_s23 }
  0x14   :  { %3920 = sst [smem:[#allocation38_spill]] %s3885_s24 }
  0x15   :  { %30 = vsyncpa [#allocation4], 0 }
  0x16   :  { %32 = vsyncpa [#allocation4 + $0x1], 0  ;;  %s3334_s5 = smov 0   ;;  %s3336_s26 = smov 0  }
  0x17   :  { %s3338_s27 = smov 0   ;;  %s3340_s28 = smov 0  }
  0x18   :  { %s3342_s6 = smov 0   ;;  %s3344_s2 = smov 0  }
  0x19   :  { %s3346_s29 = smov 0   ;;  %s3348_s0 = smov 0  }
  0x1a LB: > { %3921 = sst [smem:[#allocation6_spill]] %s3166_s5  ;;  %s2634_s7 = sadd.s32 4294967295, %s3194_s0   ;;  %s3194_s0 = sphi %s3348_s0, %s38_s0   ;;  %s3190_s29 = sphi %s3346_s29, %s3984_s29   ;;  %s3186_s2 = sphi %s3344_s2, %s3983_s2   ;;  %s3182_s6 = sphi %s3342_s6, %s3982_s6   ;;  %s3178_s28 = sphi %s3340_s28, %s3981_s28   ;;  %s3174_s27 = sphi %s3338_s27, %s3980_s27   ;;  %s3170_s26 = sphi %s3336_s26, %s3986_s26   ;;  %s3166_s5 = sphi %s3334_s5, %s3985_s5  }
  0x1b   : > { %3922 = sst [smem:[#allocation7_spill]] %s3174_s27  ;;  %s2635_s30 = sadd.s32 4294967294, %s3194_s0  }
  0x1c   : > { %3923 = sst [smem:[#allocation8_spill]] %s3178_s28  ;;  %s47_s3 = sadd.s32 1, %s3186_s2 }
  0x1d   : > { %3924 = sst [smem:[#allocation9_spill]] %s3182_s6  ;;  %p48_p0 = scmp.ge.s32.totalorder %s47_s3, 2 }
  0x1e   : > { %3925 = sst [smem:[#allocation10_spill]] %s3186_s2  ;;  %s50_s25 = sadd.s32 1, %s3190_s29 }
  0x1f   : > { %3926 = sst [smem:[#allocation11_spill]] %s3190_s29  ;;  %p646_p1 = scmp.ne.s32.totalorder %s3174_s27, %s3170_s26 }
  0x20   : > { %3927 = sst [smem:[#allocation12_spill]] %s3194_s0  ;;  %p647_p2 = scmp.eq.s32.totalorder %s2634_s7, 3 }
  0x21   : > { %s3988_s3 = smov (%p48_p0, %s47_s3), 0  ;;  %s3990_s25 = smov (!%p48_p0, %s50_s25), %s3190_s29 }
  0x22   : > { %3928 = sst [smem:[#allocation13_spill]] %s3988_s3  ;;  %p3383_p3 = por %p647_p2, %p646_p1 }
  0x23   : > { %p652_p4 = scmp.ne.s32.totalorder %s3170_s26, %s3166_s5  ;;  %p52_p5 = scmp.ge.s32.totalorder %s3990_s25, 2 }
  0x24   : > { %s3929_s8 = scalar_select %p3383_p3, 1, 0 }
  0x25   : > { %p653_p6 = scmp.eq.s32.totalorder %s2635_s30, 3  ;;  %p2638_p7 = scmp.ge.s32.totalorder %s3194_s0, 1 }
  0x26   : > { %3930 = sst [smem:[#allocation14_spill]] %s3929_s8  ;;  %p793_p8 = scmp.lt.s32.totalorder %s3194_s0, 5 }
  0x27   : > { %s3992_s25 = smov (%p52_p5, %s3990_s25), 0  ;;  %p3393_p9 = por %p653_p6, %p652_p4 }
  0x28   : > { %3931 = sst [smem:[#allocation15_spill]] %s3992_s25  ;;  %p794_p10 = pnand %p2638_p7, %p793_p8 }
  0x29   : > { %s3932_s4 = scalar_select %p3393_p9, 1, 0 }
  0x2a   : > { %s633_s1 = ssub.s32 %s3190_s29, %s3992_s25  ;;  %s636_s7 = sadd.s32 1, %s3174_s27 }
  0x2b   : > { %3933 = sst [smem:[#allocation16_spill]] %s3932_s4  ;;  %p634_p11 = scmp.eq.s32.totalorder %s633_s1, 0 }
  0x2c   : > { %797 = sbr.rel (%p794_p10) target bundleno = 3749 (0xea5), region = 112 }
  0x2d   : > { %s3401_s3 = scalar_select %p634_p11, %s3174_s27, %s636_s7  }
  0x2f   : > { %3934 = sst [smem:[#allocation17_spill]] %s3401_s3 }
  0x31   : > { %p911_p12 = scmp.lt.s32.totalorder %s3182_s6, 1  ;;  %p916_p13 = scmp.lt.s32.totalorder %s3178_s28, 1 }
  0x32   : > { %s3935_s0 = sld [smem:[#allocation19_spill]] }
  0x33   : > { %s912_s2 = scalar_select %p911_p12, %s3182_s6, 1 }
  0x34   : > { %s3408_s5 = scalar_select %p916_p13, %s3178_s28, 1 }
  0x35   : > { %s2911_s1 = smul.u32 12, %s912_s2  ;;  %s2746_s7 = sshll.u32 %s912_s2, 4 }
  0x36   : > { %s2640_s25 = sshll.u32 %s3408_s5, 1  ;;  %s3936_s22 = sld [smem:[#allocation25_spill]] }
  0x37   : > { %s2742_s19 = sshll.u32 %s3408_s5, 4  ;;  %s3937_s11 = sld [smem:[#allocation28_spill]] }
  0x38   : > { %s3418_s24 = scalar_lea.vmem %s3935_s0, %s2911_s1  ;;  %s3938_s13 = sld [smem:[#allocation29_spill]] }
  0x39   : > { %s3459_s27 = scalar_lea.vmem %s3878_s17, %s2742_s19  ;;  %s3942_s0 = sld [smem:[#allocation32_spill]] }
  0x3a   : > { %s3943_s23 = sld [smem:[#allocation34_spill]] }
  0x3b   : > { %s3944_s2 = sld [smem:[#allocation33_spill]] }
  0x3c   : > { %s3423_s21 = scalar_lea.vmem %s3936_s22, %s2640_s25  ;;  %s3945_s3 = sld [smem:[#allocation37_spill]] }
  0x3d   : > { %s3433_s29 = scalar_lea.vmem %s3937_s11, %s2742_s19  ;;  %s3947_s4 = sld [smem:[#allocation8_spill]] }
  0x3e   : > { %s3442_s6 = scalar_lea.vmem %s3938_s13, %s2742_s19  ;;  %s3946_s19 = sand.u32 1, %s3170_s26  }
  0x3f   : > { %3939 = sst [smem:[#allocation18_spill]] %s3442_s6  ;;  %s955_s13 = scalar_lea.vmem %s3942_s0, %s3408_s5 }
  0x40   : > { %s2745_s6 = sshll.u32 %s3408_s5, 5  ;;  %s963_s14 = scalar_lea.vmem %s3943_s23, %s3408_s5 }
  0x41   : > { %s3473_s15 = scalar_lea.vmem %s3944_s2, %s2745_s6  ;;  %s3482_s30 = scalar_lea.vmem [#allocation3], %s3946_s19 }
  0x42   : > { %s3478_s11 = scalar_lea.vmem %s3945_s3, %s2746_s7 }
  0x43   : > { %p2651_p0 = scmp.ne.s32.totalorder %s3947_s4, 0 }
  0x44   : > { %s3948_s22 = sld [smem:[#allocation20_spill]] (!%p2651_p0) }
  0x45   : > { %973 = sbr.rel (%p2651_p0) target bundleno = 656 (0x290), region = 116  ;;  %s3949_s19 = sld [smem:[#allocation26_spill]] (!%p2651_p0) }
  0x46   : > { %s3950_s1 = sld [smem:[#allocation21_spill]] (!%p2651_p0) }
  0x47   : > { %s3951_s2 = sld [smem:[#allocation22_spill]] (!%p2651_p0) }
  0x48   : > { %s3952_s7 = sld [smem:[#allocation27_spill]] (!%p2651_p0) }
  0x49   : > { %s3953_s18 = sld [smem:[#allocation23_spill]] (!%p2651_p0) }
  0x4a   : > { %v2995_v0 = vld [vmem:[%s3948_s22 + $0x78] sm:$0xff]   ;;  %v2999_v4 = vld [vmem:[%s3948_s22 + $0x70] sm:$0xff]   ;;  %v3003_v8 = vld [vmem:[%s3948_s22 + $0x68] sm:$0xff]   ;;  %v1078_v28 = vlaneseq  ;;  %v3196_v36 = vmov 1983009808   ;;  %v3197_v63 = vmov 0.0  }
  0x4b   : > { %v2996_v1 = vld [vmem:[%s3948_s22 + $0xf8] sm:$0xff]   ;;  %2747 = vmatprep.subr.bf16.mxu0 %v2995_v0  ;;  %v3000_v5 = vld [vmem:[%s3948_s22 + $0xf0] sm:$0xff]   ;;  %v3004_v9 = vld [vmem:[%s3948_s22 + $0xe8] sm:$0xff]   ;;  %v1076_v37 = vunpack.c.l.s4 %v3196_v36  ;;  %vm3198_vm0 = vmmov 0   ;;  %vm1568_vm1 = vcmask 130048   ;;  %vm1517_vm2 = vcmask 1040384  }
  0x4c   : > { %v2997_v2 = vld [vmem:[%s3948_s22 + $0x38] sm:$0xff]   ;;  %2769 = vmatprep.subr.bf16.mxu1 %v2996_v1  ;;  %v3001_v6 = vld [vmem:[%s3948_s22 + $0x30] sm:$0xff]   ;;  %v3005_v10 = vld [vmem:[%s3948_s22 + $0x28] sm:$0xff]   ;;  %v1079_v33 = vshrl.u32 %v1078_v28, 7  ;;  %vm1523_vm3 = vcmask 258048   ;;  %vm1619_vm4 = vcmask 1044480  }
  0x4d   : > { %v2998_v3 = vld [vmem:[%s3948_s22 + $0xb8] sm:$0xff]   ;;  %2748 = vmatpush3.bf16.msra.mxu0 %v2997_v2  ;;  %v3002_v7 = vld [vmem:[%s3948_s22 + $0xb0] sm:$0xff]   ;;  %v3006_v11 = vld [vmem:[%s3948_s22 + $0xa8] sm:$0xff]   ;;  %v1077_v38 = vunpack.c.0.s8 %v1076_v37  ;;  %vm1623_vm5 = vcmask 253952   ;;  %vm1621_vm6 = vcmask 261120  }
  0x4e   : > { %2770 = vmatpush3.bf16.msra.mxu1 %v2998_v3  ;;  %2749 = vmatprep.subr.bf16.mxu0 %v2999_v4  ;;  %v3007_v12 = vld [vmem:[%s3948_s22 + $0x60] sm:$0xff]   ;;  %v3011_v16 = vld [vmem:[%s3948_s22 + $0x58] sm:$0xff]   ;;  %v3015_v20 = vld [vmem:[%s3948_s22 + $0x50] sm:$0xff]  }
  0x4f   : > { %2771 = vmatprep.subr.bf16.mxu1 %v3000_v5  ;;  %v3008_v13 = vld [vmem:[%s3948_s22 + $0xe0] sm:$0xff]   ;;  %v3012_v17 = vld [vmem:[%s3948_s22 + $0xd8] sm:$0xff]   ;;  %v3016_v21 = vld [vmem:[%s3948_s22 + $0xd0] sm:$0xff]   ;;  %v1080_v40 = vsub.s32 %v1077_v38, %v1079_v33 }
  0x50   : > { %v3009_v14 = vld [vmem:[%s3948_s22 + $0x20] sm:$0xff]   ;;  %v3013_v18 = vld [vmem:[%s3948_s22 + $0x18] sm:$0xff]   ;;  %v3017_v22 = vld [vmem:[%s3948_s22 + $0x10] sm:$0xff]  }
  0x51   : > { %2750 = vmatpush3.bf16.msra.mxu0 %v3001_v6  ;;  %v3010_v15 = vld [vmem:[%s3948_s22 + $0xa0] sm:$0xff]   ;;  %v3014_v19 = vld [vmem:[%s3948_s22 + $0x98] sm:$0xff]   ;;  %v3018_v23 = vld [vmem:[%s3948_s22 + $0x90] sm:$0xff]  }
  0x52   : > { %2772 = vmatpush3.bf16.msra.mxu1 %v3002_v7  ;;  %2751 = vmatprep.subr.bf16.mxu0 %v3003_v8  ;;  %v3019_v24 = vld [vmem:[%s3948_s22 + $0x48] sm:$0xff]   ;;  %v3023_v29 = vld [vmem:[%s3948_s22 + $0x40] sm:$0xff]   ;;  %v3028_v35 = vld [vmem:[%s3948_s22 + $0x178] sm:$0xff]  }
  0x53   : > { %2773 = vmatprep.subr.bf16.mxu1 %v3004_v9  ;;  %v3020_v25 = vld [vmem:[%s3948_s22 + $0xc8] sm:$0xff]   ;;  %v3024_v30 = vld [vmem:[%s3948_s22 + $0xc0] sm:$0xff]   ;;  %v3029_v45 = vld [vmem:[%s3948_s22 + $0x138] sm:$0xff]  }
  0x54   : > { %v3021_v26 = vld [vmem:[%s3948_s22 + $0x8] sm:$0xff]   ;;  %v3025_v31 = vld [vmem:[%s3948_s22] sm:$0xff]   ;;  %v3030_v46 = vld [vmem:[%s3948_s22 + $0x170] sm:$0xff]  }
  0x55   : > { %2752 = vmatpush3.bf16.msra.mxu0 %v3005_v10  ;;  %v3022_v27 = vld [vmem:[%s3948_s22 + $0x88] sm:$0xff]   ;;  %v3026_v32 = vld [vmem:[%s3948_s22 + $0x80] sm:$0xff]   ;;  %v3031_v47 = vld [vmem:[%s3948_s22 + $0x130] sm:$0xff]  }
  0x56   : > { %2774 = vmatpush3.bf16.msra.mxu1 %v3006_v11  ;;  %2753 = vmatprep.subr.bf16.mxu0 %v3007_v12  ;;  %v974_v34 = vld [vmem:[%s3418_s24] sm:$0xff]  ;;  %v3032_v48 = vld [vmem:[%s3948_s22 + $0x168] sm:$0xff]   ;;  %v3036_v54 = vld [vmem:[%s3948_s22 + $0x158] sm:$0xff]  }
  0x57   : > { %2775 = vmatprep.subr.bf16.mxu1 %v3008_v13  ;;  %v1074_v39 = vcombine.high %v974_v34, %v974_v34  ;;  %v1081_v41 = vrot.slane %v974_v34, %v1080_v40  ;;  %v2652_v49 = vld.sshfl [vmem:[%s3418_s24 + $0x8] sm:$0x33 pattern:$0x76325410]  ;;  %v3034_v52 = vld [vmem:[%s3948_s22 + $0x160] sm:$0xff]   ;;  %v3037_v55 = vld [vmem:[%s3948_s22 + $0x118] sm:$0xff]  }
  0x58   : > { %v3033_v50 = vld [vmem:[%s3948_s22 + $0x128] sm:$0xff]   ;;  %v1098_v51 = vcombine.high %v2652_v49, %v2652_v49  ;;  %v3035_v53 = vld [vmem:[%s3948_s22 + $0x120] sm:$0xff]   ;;  %v3038_v56 = vld [vmem:[%s3948_s22 + $0x150] sm:$0xff]  }
  0x59   : > { %2754 = vmatpush3.bf16.msra.mxu0 %v3009_v14  ;;  %v1088_v42 = vrot.slane %v1074_v39, %v1080_v40  ;;  %v1089_v43 = vcombine.high %v1081_v41, %v1081_v41  ;;  %v3039_v57 = vld [vmem:[%s3948_s22 + $0x110] sm:$0xff]   ;;  %v3040_v58 = vld [vmem:[%s3948_s22 + $0x148] sm:$0xff]   ;;  %v3042_v60 = vld [vmem:[%s3948_s22 + $0x140] sm:$0xff]  }
  0x5a   : > { %2776 = vmatpush3.bf16.msra.mxu1 %v3010_v15  ;;  %2755 = vmatprep.subr.bf16.mxu0 %v3011_v16  ;;  %v3041_v59 = vld [vmem:[%s3948_s22 + $0x108] sm:$0xff]   ;;  %v3043_v61 = vld [vmem:[%s3948_s22 + $0x100] sm:$0xff]  }
  0x5b   : > { %2777 = vmatprep.subr.bf16.mxu1 %v3012_v17  ;;  %v1090_v44 = vcombine.high %v1088_v42, %v1088_v42  ;;  %1425 = vmatprep.mubr.bf16.mxu0 %v1089_v43  ;;  %v3044_v62 = vld [vmem:[%s3949_s19] sm:$0xff]   ;;  %s3954_s19 = sld [smem:[#allocation24_spill]] }
  0x5c   : > { %v1552_v0 = vld [vmem:[%s3423_s21] sm:$0x3] }
  0x5d   : > { %2756 = vmatpush3.bf16.msra.mxu0 %v3013_v18  ;;  %1465 = vmatprep.mubr.bf16.mxu1 %v1090_v44  ;;  %v1513_v18 = vld [vmem:[%s3950_s1] sm:$0x1] }
  0x5e   : > { %2778 = vmatpush3.bf16.msra.mxu1 %v3014_v19  ;;  %2757 = vmatprep.subr.bf16.mxu0 %v3015_v20  ;;  %v1519_v20 = vld [vmem:[%s3951_s2] sm:$0x1f] }
  0x5f   : > { %2779 = vmatprep.subr.bf16.mxu1 %v3016_v21  ;;  %v2703_v36 = vld [vmem:[%s3952_s7] ss:$0 sm:$0xff] }
  0x60   : > { %v2701_v39 = vld [vmem:[%s3953_s18] ss:$0 sm:$0xff] }
  0x61   : > { %2758 = vmatpush3.bf16.msra.mxu0 %v3017_v22 }
  0x62   : > { %2780 = vmatpush3.bf16.msra.mxu1 %v3018_v23  ;;  %2759 = vmatprep.subr.bf16.mxu0 %v3019_v24 }
  0x63   : > { %2781 = vmatprep.subr.bf16.mxu1 %v3020_v25 }
  0x65   : > { %2760 = vmatpush3.bf16.msra.mxu0 %v3021_v26 }
  0x66   : > { %2782 = vmatpush3.bf16.msra.mxu1 %v3022_v27  ;;  %2761 = vmatprep.subr.bf16.mxu0 %v3023_v29 }
  0x67   : > { %2783 = vmatprep.subr.bf16.mxu1 %v3024_v30 }
  0x69   : > { %2762 = vmatpush3.bf16.msra.mxu0 %v3025_v31 }
  0x6a   : > { %2784 = vmatpush3.bf16.msra.mxu1 %v3026_v32  ;;  %2791 = vmatprep.subr.bf16.mxu0 %v3028_v35 }
  0x6b   : > { %2839 = vmatprep.subr.bf16.mxu1 %v3197_v63 }
  0x6c   : > { %1426 = vmatmul.mubr.bf16.vlgmr.msra.gmra.mxu0 %v1081_v41  ;;  %v2702_v41 = vld [vmem:[%s3954_s19] ss:$0 sm:$0xff] }
  0x6d   : > { %1466 = vmatmul.mubr.bf16.vlgmr.msra.gmra.mxu1 %v1088_v42  ;;  %2792 = vmatpush3.bf16.msra.mxu0 %v3029_v45 }
  0x6e   : > { %2793 = vmatprep.subr.bf16.mxu0 %v3030_v46  ;;  %1505 = vmatprep.mubr.bf16.mxu0 %v1098_v51 }
  0x6f   : > { %2841 = vmatprep.mubr.msk.bf16.mxu1 %vm3198_vm0, %v3197_v63  ;;  %2840 = vmatpush3.bf16.msra.mxu1 %v3044_v62 }
  0x71   : > { %2794 = vmatpush3.bf16.msra.mxu0 %v3031_v47 }
  0x72   : > { %2795 = vmatprep.subr.bf16.mxu0 %v3032_v48 }
  0x75   : > { %2796 = vmatpush3.bf16.msra.mxu0 %v3033_v50  ;;  %2842 = vmatmul.mubr.msk.bf16.vlgmr.msra.gmra.mxu1 %vm1568_vm1, %v1552_v0 }
  0x76   : > { %2797 = vmatprep.subr.bf16.mxu0 %v3034_v52 }
  0x79   : > { %2798 = vmatpush3.bf16.msra.mxu0 %v3035_v53 }
  0x7a   : > { %2799 = vmatprep.subr.bf16.mxu0 %v3036_v54 }
  0x7d   : > { %2800 = vmatpush3.bf16.msra.mxu0 %v3037_v55 }
  0x7e   : > { %2801 = vmatprep.subr.bf16.mxu0 %v3038_v56 }
  0x81   : > { %2802 = vmatpush3.bf16.msra.mxu0 %v3039_v57 }
  0x82   : > { %2803 = vmatprep.subr.bf16.mxu0 %v3040_v58 }
  0x85   : > { %2804 = vmatpush3.bf16.msra.mxu0 %v3041_v59 }
  0x86   : > { %2805 = vmatprep.subr.bf16.mxu0 %v3042_v60 }
  0x89   : > { %2806 = vmatpush3.bf16.msra.mxu0 %v3043_v61 }
  0x8c   : > { %1506 = vmatmul.mubr.bf16.vlgmr.msra.gmra.mxu0 %v2652_v49 }
 0x12c   : > { %v2763_v1 = vpop.f32.mrf.mxu0 }
 0x12d   : > { %v2785_v2 = vpop.f32.mrf.mxu1 }
 0x12e   : > { %v2764_v3 = vpop.f32.mrf.mxu0 }
 0x12f   : > { %v2786_v4 = vpop.f32.mrf.mxu1  ;;  %v2765_v9 = vadd.f32 %v2764_v3, %v2763_v1 }
 0x130   : > { %v2766_v5 = vpop.f32.mrf.mxu0  ;;  %v2787_v10 = vadd.f32 %v2786_v4, %v2785_v2 }
 0x131   : > { %v2788_v6 = vpop.f32.mrf.mxu1 }
 0x132   : > { %v2767_v7 = vpop.f32.mrf.mxu0  ;;  %v1468_v13 = vadd.f32 %v2787_v10, %v2765_v9 }
 0x133   : > { %v2789_v8 = vpop.f32.mrf.mxu1 }
 0x135   : > { %v1606_v29 = vpop.f32.mrf.mxu1 }
 0x136   : > { %v1607_v37 = vadd.f32 %v2703_v36, %v1606_v29 }
 0x137   : > { %v2843_v30 = vpop.f32.mrf.mxu1 }
 0x138   : > { %v1613_v43 = vrot.slane %v1607_v37, 7 }
 0x139   : > { %v1609_v31 = vpop.f32.mrf.mxu1 }
 0x13b   : > { %v2844_v32 = vpop.f32.mrf.mxu1 }
 0x14c   : > { %v2807_v11 = vpop.f32.mrf.mxu0 }
 0x14e   : > { %v2808_v12 = vpop.f32.mrf.mxu0 }
 0x14f   : > { %v2809_v14 = vadd.f32 %v2808_v12, %v2807_v11 }
 0x150   : > { %v2810_v15 = vpop.f32.mrf.mxu0 }
 0x151   : > { %v1508_v16 = vadd.f32 %v2809_v14, %v1468_v13 }
 0x152   : > { %v2811_v17 = vpop.f32.mrf.mxu0 }
 0x153   : > { %v1515_v19 = vrot.slane %v1508_v16, 7 }
 0x155   : > { %v1518_v21 = vsel %vm1517_vm2, %v1513_v18, %v1515_v19 }
 0x156   : > { %v1520_v22 = vadd.f32 %v1519_v20, %v1518_v21 }
 0x158   : > { %v1524_v23 = vsel %vm1523_vm3, %v1520_v22, 0.0 }
 0x159   : > { %1525 = vadd.xlane.f32.xlu0 %v1524_v23 }
 0x1e2   : > { %v1526_v24 = vpop.xlane.xlu0 %1525 }
 0x1e3   : > { %v1528_v25 = vmul.f32 0.03125, %v1526_v24 }
 0x1e5   : > { %v1529_v26 = vsub.f32 %v1520_v22, %v1528_v25 }
 0x1e7   : > { %v1530_v27 = vmul.f32 %v1529_v26, %v1529_v26 }
 0x1e9   : > { %v1531_v28 = vsel %vm1523_vm3, %v1530_v27, 0.0 }
 0x1ea   : > { %1532 = vadd.xlane.f32.xlu0 %v1531_v28 }
 0x273   : > { %v1533_v33 = vpop.xlane.xlu0 %1532 }
 0x274   : > { %v1534_v34 = vmul.f32 0.03125, %v1533_v33 }
 0x276   : > { %v1535_v35 = vadd.f32 1e-05, %v1534_v34 }
 0x278   : > { %3045 = vrsqrt.f32 %v1535_v35 }
 0x285   : > { %v3046_v38 = vpop.eup %3045 }
 0x286   : > { %v1537_v40 = vmul.f32 %v3046_v38, %v1529_v26 }
 0x288   : > { %v1544_v42 = vmul.f32 %v2701_v39, %v1537_v40 }
 0x28a   : > { %v1551_v44 = vadd.f32 %v2702_v41, %v1544_v42 }
 0x28c   : > { %v1616_v45 = vrot.slane %v1551_v44, 4  ;;  %v1618_v46 = vsel %vm1517_vm2, %v1551_v44, %v1613_v43 }
 0x28e   : > { %v1620_v47 = vsel %vm1619_vm4, %v1618_v46, %v1616_v45  ;;  %1624 = vst.msk [vmem:[#allocation2 + $0x8] sm:$0x1] %vm1623_vm5, %v1616_v45 }
 0x28f   : > { %1622 = vst.msk [vmem:[#allocation2] sm:$0xff] %vm1621_vm6, %v1620_v47 }
 0x290 PF: > { %s3955_s4 = sld [smem:[#allocation8_spill]] }
 0x296   : > { %p2706_p1 = scmp.le.s32.totalorder %s3955_s4, 0 }
 0x297   : > { %s3956_s23 = sld [smem:[#allocation26_spill]] (!%p2706_p1) }
 0x298   : > { %1628 = sbr.rel (%p2706_p1) target bundleno = 873 (0x369), region = 120  ;;  %s3957_s6 = sld [smem:[#allocation27_spill]] (!%p2706_p1) }
 0x29d   : > { %v3047_v48 = vld [vmem:[%s3956_s23] sm:$0xff]   ;;  %v3199_v49 = vmov 0.0   ;;  %vm3200_vm7 = vmmov 0   ;;  %vm1645_vm8 = vcmask 130048   ;;  %vm1689_vm9 = vcmask 257024  }
 0x29e   : > { %2845 = vmatprep.subr.bf16.mxu0 %v3199_v49  ;;  %2847 = vmatprep.mubr.msk.bf16.mxu0 %vm3200_vm7, %v3199_v49  ;;  %v1629_v50 = vld [vmem:[%s3423_s21] sm:$0x3] }
 0x29f   : > { %2846 = vmatpush3.bf16.msra.mxu0 %v3047_v48  ;;  %v2707_v51 = vld [vmem:[%s3957_s6] ss:$0 sm:$0xff] }
 0x2a2   : > { %2848 = vmatmul.mubr.msk.bf16.vlgmr.msra.gmra.mxu0 %vm1645_vm8, %v1629_v50 }
 0x362   : > { %v1683_v52 = vpop.f32.mrf.mxu0 }
 0x363   : > { %v1684_v53 = vadd.f32 %v2707_v51, %v1683_v52 }
 0x364   : > { %v2849_v54 = vpop.f32.mrf.mxu0 }
 0x365   : > { %1690 = vst.msk [vmem:[#allocation2 + $0x1] sm:$0xf] %vm1689_vm9, %v1684_v53 }
 0x366   : > { %v1686_v55 = vpop.f32.mrf.mxu0 }
 0x368   : > { %v2850_v56 = vpop.f32.mrf.mxu0 }
 0x369 PF: > { %vm1695_vm10 = vcmask 261120   ;;  %v3662_v58 = vld [vmem:[#allocation2 + $0x8] sm:$0x1]  ;;  %vm1699_vm11 = vcmask 253952   ;;  %v3201_v8 = vmov 0.0   ;;  %vm3202_vm12 = vmmov 0   ;;  %s3958_s3 = scalar_lea.vmem %s3870_s9, %s3408_s5  ;;  %s3959_s8 = scalar_lea.vmem %s3871_s10, %s3408_s5 }
 0x36a   : > { %v1700_v60 = vsel %vm1699_vm11, %v3662_v58, 0.0  ;;  %v3058_v7 = vld [vmem:[%s3433_s29 + $0x8] sm:$0xff]   ;;  %2851 = vmatprep.subr.bf16.mxu0 %v3201_v8  ;;  %2855 = vmatprep.mubr.msk.bf16.mxu0 %vm3202_vm12, %v3201_v8  ;;  %v3059_v9 = vld [vmem:[%s3433_s29] sm:$0xff]   ;;  %s3960_s20 = scalar_lea.vmem %s3873_s12, %s3408_s5  ;;  %s3203_s19 = smov 112   ;;  %vm1821_vm13 = vcmask 130048   ;;  %vm1919_vm14 = vcmask 72704  }
 0x36b   : > { %2852 = vmatpush3.bf16.msra.mxu0 %v3058_v7  ;;  %2859 = vmatprep.subr.bf16.mxu1 %v3201_v8  ;;  %v2710_v18 = vld [vmem:[%s3958_s3] ss:$0 sm:$0xff]  ;;  %s3204_s4 = smov 96   ;;  %vm1923_vm15 = vcmask 65536   ;;  %s3205_s0 = smov 64   ;;  %vm1972_vm0 = vcmask 1043456  }
 0x36c   : > { %v3660_v57 = vld [vmem:[#allocation2] sm:$0xff]  ;;  %2853 = vmatprep.subr.bf16.mxu0 %v3201_v8  ;;  %2861 = vmatprep.mubr.msk.bf16.mxu1 %vm3202_vm12, %v3201_v8  ;;  %vm1973_vm1 = vcmask 1044480   ;;  %s3961_s1 = sld [smem:[#allocation18_spill]]  ;;  %s3207_s23 = smov 16   ;;  %vm2317_vm2 = vcmask 523264  }
 0x36d   : > { %v1696_v59 = vsel %vm1695_vm10, %v3660_v57, 0.0  ;;  %v2711_v22 = vld [vmem:[%s3959_s8] ss:$0 sm:$0xff]  ;;  %s3962_s6 = sld [smem:[#allocation30_spill]]  ;;  %s3966_s18 = scalar_lea.vmem %s3877_s16, %s3408_s5 }
 0x36e   : > { %1697 = vadd.xlane.f32.xlu0 %v1696_v59  ;;  %v2712_v28 = vld [vmem:[%s3960_s20] ss:$0 sm:$0xff]  ;;  %s3964_s7 = sld [smem:[#allocation31_spill]] }
 0x36f   : > { %2854 = vmatpush3.bf16.msra.mxu0 %v3059_v9 }
 0x370   : > { %2865 = vmatprep.subr.bf16.mxu0 %v3201_v8 }
 0x372   : > { %1701 = vadd.xlane.f32.xlu0 %v1700_v60 }
 0x373   : > { %s3963_s21 = scalar_lea.vmem %s3962_s6, %s3408_s5 }
 0x3f7   : > { %v1698_v61 = vpop.xlane.xlu0 %1697 }
 0x3f8   : > { %v1704_v62 = vmul.f32 0.03125, %v1698_v61 }
 0x3fa   : > { %v1706_v63 = vsub.f32 %v3660_v57, %v1704_v62 }
 0x3fb   : > { %v1702_v0 = vpop.xlane.xlu0 %1701 }
 0x3fc   : > { %v1705_v1 = vmul.f32 0.03125, %v1702_v0  ;;  %v1708_v2 = vmul.f32 %v1706_v63, %v1706_v63 }
 0x3fe   : > { %v1707_v3 = vsub.f32 %v3662_v58, %v1705_v1  ;;  %v1710_v4 = vsel %vm1695_vm10, %v1708_v2, 0.0 }
 0x3ff   : > { %1711 = vadd.xlane.f32.xlu1 %v1710_v4 }
 0x400   : > { %v1709_v5 = vmul.f32 %v1707_v3, %v1707_v3 }
 0x402   : > { %v1713_v6 = vsel %vm1699_vm11, %v1709_v5, 0.0 }
 0x403   : > { %1714 = vadd.xlane.f32.xlu1 %v1713_v6 }
 0x488   : > { %v1712_v10 = vpop.xlane.xlu1 %1711 }
 0x489   : > { %v1716_v11 = vmul.f32 0.03125, %v1712_v10 }
 0x48b   : > { %v1718_v12 = vadd.f32 1e-05, %v1716_v11 }
 0x48c   : > { %v1715_v13 = vpop.xlane.xlu1 %1714 }
 0x48d   : > { %3068 = vrsqrt.f32 %v1718_v12  ;;  %v1717_v14 = vmul.f32 0.03125, %v1715_v13 }
 0x48f   : > { %v1719_v15 = vadd.f32 1e-05, %v1717_v14 }
 0x491   : > { %3070 = vrsqrt.f32 %v1719_v15  ;;  %v3206_v15 = vmov 65535  }
 0x49a   : > { %v3069_v16 = vpop.eup %3068 }
 0x49b   : > { %v1722_v17 = vmul.f32 %v3069_v16, %v1706_v63  ;;  %v1974_v16 = vsel %vm1972_vm0, 4294967295, %v3206_v15 }
 0x49d   : > { %v1730_v21 = vmul.f32 %v2710_v18, %v1722_v17 }
 0x49e   : > { %v3071_v19 = vpop.eup %3070 }
 0x49f   : > { %v1723_v20 = vmul.f32 %v3071_v19, %v1707_v3  ;;  %v1738_v24 = vadd.f32 %v2711_v22, %v1730_v21 }
 0x4a1   : > { %v1731_v23 = vmul.f32 %v2710_v18, %v1723_v20  ;;  %v1975_v18 = vsel %vm1973_vm1, %v1974_v16, 0 }
 0x4a3   : > { %v1739_v25 = vadd.f32 %v2711_v22, %v1731_v23 }
 0x4a5   : > { %v1740_v26 = vpack.c.bf16 %v1739_v25, %v1738_v24 }
 0x4a7   : > { %2856 = vmatmul.mubr.msk.bf16.vlgmr.msra.gmra.mxu0 %vm1695_vm10, %v1740_v26 }
 0x4a8   : > { %2867 = vmatprep.mubr.msk.bf16.mxu0 %vm3202_vm12, %v3201_v8 }
 0x567   : > { %v1801_v27 = vpop.f32.mrf.mxu0 }
 0x568   : > { %v1802_v31 = vadd.f32 %v2712_v28, %v1801_v27 }
 0x569   : > { %v2857_v29 = vpop.f32.mrf.mxu0 }
 0x56b   : > { %v1804_v30 = vpop.f32.mrf.mxu0 }
 0x56c   : > { %v1805_v32 = vadd.f32 %v2712_v28, %v1804_v30 }
 0x56d   : > { %v2858_v33 = vpop.f32.mrf.mxu0 }
 0x56e   : > { %v3048_v34 = vpack.i.bf16 %v1805_v32, %v1802_v31  ;;  %v3700_v35 = vpack.c.bf16 %v1805_v32, %v1802_v31 }
 0x570   : > { %3049 = vrot.lane.b32.xlu0 %v3048_v34, %s3203_s19 }
 0x5e2   : > { %v3050_v36 = vpop.permute.xlu0 %3049 }
 0x5e3   : > { %v3052_v37 = vunpack.i.h.bf16 %v3050_v36  ;;  %v3051_v38 = vunpack.i.l.bf16 %v3050_v36  ;;  %v3060_v36 = vld [vmem:[%s3961_s1 + $0x8] sm:$0xff]  }
 0x5e5   : > { %v3702_v39 = vpack.c.bf16 %v3052_v37, %v3051_v38  ;;  %v3061_v37 = vld [vmem:[%s3961_s1] sm:$0xff]  }
 0x5e7   : > { %1870 = vrot.lane.b32.xlu1 %v3702_v39, %s3204_s4 }
 0x5eb   : > { %1819 = vrot.lane.b32.xlu1 %v3700_v35, %s3204_s4 }
 0x659   : > { %v1871_v40 = vpop.permute.xlu1 %1870 }
 0x65a   : > { %v1876_v41 = vsel %vm1821_vm13, %v1871_v40, 0 }
 0x65b   : > { %2866 = vmatpush3.bf16.xpose.msra.mxu0 %v1876_v41 }
 0x65c   : > { %2877 = vmatprep.subr.bf16.mxu0 %v3201_v8 }
 0x65d   : > { %v1820_v42 = vpop.permute.xlu1 %1819 }
 0x65e   : > { %v1826_v43 = vsel %vm1821_vm13, %v1820_v42, 0 }
 0x65f   : > { %2860 = vmatpush3.bf16.xpose.msra.mxu1 %v1826_v43 }
 0x660   : > { %2871 = vmatprep.subr.bf16.mxu1 %v3201_v8 }
 0x662   : > { %2868 = vmatmul.mubr.msk.bf16.vlgmr.msra.gmra.mxu0 %vm1821_vm13, %v3702_v39 }
 0x663   : > { %2879 = vmatprep.mubr.msk.bf16.mxu0 %vm3202_vm12, %v3201_v8 }
 0x666   : > { %2862 = vmatmul.mubr.msk.bf16.vlgmr.msra.gmra.mxu1 %vm1821_vm13, %v3700_v35 }
 0x667   : > { %2873 = vmatprep.mubr.msk.bf16.mxu1 %vm3202_vm12, %v3201_v8 }
 0x722   : > { %v1912_v44 = vpop.f32.mrf.mxu0 }
 0x723   : > { %v1927_v45 = vsel %vm1919_vm14, %v1912_v44, -inf }
 0x724   : > { %1928 = vmax.xlane.f32.xlu1 %v1927_v45  ;;  %v2869_v46 = vpop.f32.mrf.mxu0 }
 0x726   : > { %v1862_v47 = vpop.f32.mrf.mxu1  ;;  %v1915_v48 = vpop.f32.mrf.mxu0 }
 0x727   : > { %v1930_v49 = vsel %vm1923_vm15, %v1915_v48, -inf  ;;  %v1920_v53 = vsel %vm1919_vm14, %v1862_v47, -inf }
 0x728   : > { %v2863_v50 = vpop.f32.mrf.mxu1  ;;  %1931 = vmax.xlane.f32.xlu0 %v1930_v49  ;;  %v2870_v51 = vpop.f32.mrf.mxu0 }
 0x72a   : > { %v1865_v52 = vpop.f32.mrf.mxu1 }
 0x72b   : > { %v1924_v55 = vsel %vm1923_vm15, %v1865_v52, -inf }
 0x72c   : > { %v2864_v54 = vpop.f32.mrf.mxu1  ;;  %1921 = vmax.xlane.f32.xlu0 %v1920_v53  ;;  %v2720_v53 = vld [vmem:[%s3963_s21] ss:$0 sm:$0xff] }
 0x730   : > { %1925 = vmax.xlane.f32.xlu0 %v1924_v55 }
 0x7ad   : > { %v1929_v56 = vpop.xlane.xlu1 %1928 }
 0x7ae   : > { %v1935_v59 = vsub.f32 %v1912_v44, %v1929_v56 }
 0x7b0   : > { %v1941_v60 = vmul.f32 1.442695, %v1935_v59 }
 0x7b1   : > { %v1932_v61 = vpop.xlane.xlu0 %1931 }
 0x7b2   : > { %3072 = vpow2.f32 %v1941_v60  ;;  %v1936_v62 = vsub.f32 %v1915_v48, %v1932_v61 }
 0x7b4   : > { %v1943_v63 = vmul.f32 1.442695, %v1936_v62 }
 0x7b5   : > { %v1922_v0 = vpop.xlane.xlu0 %1921 }
 0x7b6   : > { %3074 = vpow2.f32 %v1943_v63  ;;  %v1933_v1 = vsub.f32 %v1862_v47, %v1922_v0 }
 0x7b8   : > { %v1937_v2 = vmul.f32 1.442695, %v1933_v1 }
 0x7b9   : > { %v1926_v3 = vpop.xlane.xlu0 %1925 }
 0x7ba   : > { %3076 = vpow2.f32 %v1937_v2  ;;  %v1934_v4 = vsub.f32 %v1865_v52, %v1926_v3 }
 0x7bc   : > { %v1939_v5 = vmul.f32 1.442695, %v1934_v4 }
 0x7be   : > { %3078 = vpow2.f32 %v1939_v5 }
 0x7bf   : > { %v3073_v6 = vpop.eup %3072 }
 0x7c0   : > { %v1951_v7 = vsel %vm1919_vm14, %v3073_v6, 0.0 }
 0x7c1   : > { %1952 = vadd.xlane.f32.xlu1 %v1951_v7 }
 0x7c3   : > { %v3075_v9 = vpop.eup %3074 }
 0x7c4   : > { %v1954_v10 = vsel %vm1923_vm15, %v3075_v9, 0.0 }
 0x7c5   : > { %1955 = vadd.xlane.f32.xlu0 %v1954_v10 }
 0x7c7   : > { %v3077_v11 = vpop.eup %3076 }
 0x7c8   : > { %v1945_v12 = vsel %vm1919_vm14, %v3077_v11, 0.0 }
 0x7c9   : > { %1946 = vadd.xlane.f32.xlu0 %v1945_v12  ;;  %v3063_v12 = vld [vmem:[%s3459_s27] sm:$0xff]  }
 0x7cb   : > { %v3079_v13 = vpop.eup %3078 }
 0x7cc   : > { %v1948_v14 = vsel %vm1923_vm15, %v3079_v13, 0.0 }
 0x7cd   : > { %1949 = vadd.xlane.f32.xlu0 %v1948_v14 }
 0x7d2   : > { %2020 = vrot.lane.b32.xlu1 %v3702_v39, %s3205_s0 }
 0x7e3   : > { %1967 = vrot.lane.b32.xlu0 %v3700_v35, %s3205_s0  ;;  %s3969_s0 = sld [smem:[#allocation8_spill]] }
 0x7e9   : > { %p2738_p2 = scmp.ne.s32.totalorder %s3969_s0, 1 }
 0x7ea   : > { %s3970_s1 = sld [smem:[#allocation35_spill]] (!%p2738_p2) }
 0x7eb   : > { %s3971_s25 = sld [smem:[#allocation36_spill]] (!%p2738_p2) }
 0x84a   : > { %v1953_v17 = vpop.xlane.xlu1 %1952 }
 0x84b   : > { %3080 = vrcp.f32 %v1953_v17 }
 0x84e   : > { %v2021_v19 = vpop.permute.xlu1 %2020  ;;  %v1956_v20 = vpop.xlane.xlu0 %1955 }
 0x84f   : > { %v2026_v21 = vand.u32 %v2021_v19, %v1975_v18  ;;  %3082 = vrcp.f32 %v1956_v20 }
 0x851   : > { %2878 = vmatpush3.bf16.msra.mxu0 %v2026_v21 }
 0x852   : > { %v1947_v22 = vpop.xlane.xlu0 %1946  ;;  %2891 = vmatprep.subr.bf16.mxu0 %v3201_v8 }
 0x853   : > { %3084 = vrcp.f32 %v1947_v22 }
 0x856   : > { %v1950_v23 = vpop.xlane.xlu0 %1949 }
 0x857   : > { %3086 = vrcp.f32 %v1950_v23 }
 0x858   : > { %v3081_v24 = vpop.eup %3080 }
 0x859   : > { %v1963_v28 = vmul.f32 %v3081_v24, %v3073_v6 }
 0x85a   : > { %v1968_v25 = vpop.permute.xlu0 %1967 }
 0x85b   : > { %v1977_v26 = vand.u32 %v1975_v18, %v1968_v25  ;;  %v2725_v25 = vld [vmem:[%s3966_s18] ss:$0 sm:$0xff] }
 0x85c   : > { %v3083_v27 = vpop.eup %3082 }
 0x85d   : > { %2872 = vmatpush3.bf16.msra.mxu1 %v1977_v26  ;;  %v1964_v29 = vmul.f32 %v3083_v27, %v3075_v9 }
 0x85e   : > { %2883 = vmatprep.subr.bf16.mxu1 %v3201_v8 }
 0x85f   : > { %v1966_v30 = vpack.c.bf16 %v1964_v29, %v1963_v28 }
 0x860   : > { %v3085_v31 = vpop.eup %3084 }
 0x861   : > { %2880 = vmatmul.mubr.msk.bf16.vlgmr.msra.gmra.mxu0 %vm1919_vm14, %v1966_v30  ;;  %v1961_v33 = vmul.f32 %v3085_v31, %v3077_v11  ;;  %v3062_v11 = vld [vmem:[%s3459_s27 + $0x8] sm:$0xff]   ;;  %s3965_s27 = scalar_lea.vmem %s3964_s7, %s3408_s5  ;;  %v3064_v30 = vld [vmem:[%s3473_s15 + $0x18] sm:$0xff]   ;;  %v3065_v31 = vld [vmem:[%s3473_s15 + $0x10] sm:$0xff]  }
 0x862   : > { %2895 = vmatprep.mubr.msk.bf16.mxu0 %vm3202_vm12, %v3201_v8  ;;  %2892 = vmatpush3.bf16.msra.mxu0 %v3062_v11  ;;  %v2724_v21 = vld [vmem:[%s3965_s27] ss:$0 sm:$0xff] }
 0x863   : > { %2893 = vmatprep.subr.bf16.mxu0 %v3201_v8 }
 0x864   : > { %v3087_v32 = vpop.eup %3086 }
 0x865   : > { %v1962_v34 = vmul.f32 %v3087_v32, %v3079_v13  ;;  %v3066_v32 = vld [vmem:[%s3473_s15 + $0x8] sm:$0xff]  }
 0x866   : > { %2894 = vmatpush3.bf16.msra.mxu0 %v3063_v12 }
 0x867   : > { %v1965_v35 = vpack.c.bf16 %v1962_v34, %v1961_v33  ;;  %v3067_v33 = vld [vmem:[%s3473_s15] sm:$0xff]  }
 0x868   : > { %v2726_v34 = vld [vmem:[%s955_s13] ss:$0 sm:$0xff] }
 0x869   : > { %2874 = vmatmul.mubr.msk.bf16.vlgmr.msra.gmra.mxu1 %vm1919_vm14, %v1965_v35 }
 0x86a   : > { %2887 = vmatprep.mubr.msk.bf16.mxu1 %vm3202_vm12, %v3201_v8  ;;  %2884 = vmatpush3.bf16.msra.mxu1 %v3060_v36 }
 0x86b   : > { %2885 = vmatprep.subr.bf16.mxu1 %v3201_v8 }
 0x86e   : > { %2886 = vmatpush3.bf16.msra.mxu1 %v3061_v37 }
 0x86f   : > { %2899 = vmatprep.subr.bf16.mxu1 %v3201_v8 }
 0x921   : > { %v2062_v38 = vpop.f32.mrf.mxu0 }
 0x923   : > { %v2881_v39 = vpop.f32.mrf.mxu0 }
 0x925   : > { %v2065_v40 = vpop.f32.mrf.mxu0 }
 0x926   : > { %v3053_v41 = vpack.i.bf16 %v2065_v40, %v2062_v38 }
 0x927   : > { %v2882_v42 = vpop.f32.mrf.mxu0 }
 0x928   : > { %3054 = vrot.lane.b32.xlu1 %v3053_v41, %s3207_s23 }
 0x929   : > { %v2013_v43 = vpop.f32.mrf.mxu1 }
 0x92b   : > { %v2875_v44 = vpop.f32.mrf.mxu1 }
 0x92d   : > { %v2016_v45 = vpop.f32.mrf.mxu1 }
 0x92f   : > { %v2876_v46 = vpop.f32.mrf.mxu1 }
 0x99a   : > { %v3055_v47 = vpop.permute.xlu1 %3054 }
 0x99b   : > { %v3057_v48 = vunpack.i.h.bf16 %v3055_v47  ;;  %v3056_v49 = vunpack.i.l.bf16 %v3055_v47 }
 0x99d   : > { %v2078_v50 = vsel %vm1821_vm13, %v2016_v45, %v3057_v48  ;;  %v2077_v51 = vsel %vm1821_vm13, %v2013_v43, %v3056_v49 }
 0x99e   : > { %v2079_v52 = vpack.c.bf16 %v2078_v50, %v2077_v51 }
 0x9a0   : > { %2888 = vmatmul.mubr.msk.bf16.vlgmr.msra.gmra.mxu1 %vm1695_vm10, %v2079_v52 }
 0x9a1   : > { %2907 = vmatprep.mubr.msk.bf16.mxu1 %vm3202_vm12, %v3201_v8  ;;  %2900 = vmatpush3.bf16.msra.mxu1 %v3064_v30 }
 0x9a2   : > { %2901 = vmatprep.subr.bf16.mxu1 %v3201_v8 }
 0x9a5   : > { %2902 = vmatpush3.bf16.msra.mxu1 %v3065_v31 }
 0x9a6   : > { %2903 = vmatprep.subr.bf16.mxu1 %v3201_v8 }
 0x9a9   : > { %2904 = vmatpush3.bf16.msra.mxu1 %v3066_v32 }
 0x9aa   : > { %2905 = vmatprep.subr.bf16.mxu1 %v3201_v8 }
 0x9ad   : > { %2906 = vmatpush3.bf16.msra.mxu1 %v3067_v33 }
 0xa60   : > { %v2140_v54 = vpop.f32.mrf.mxu1 }
 0xa61   : > { %v2141_v55 = vadd.f32 %v2720_v53, %v2140_v54 }
 0xa62   : > { %v2889_v56 = vpop.f32.mrf.mxu1 }
 0xa63   : > { %v3751_v59 = vadd.f32 %v2141_v55, %v3660_v57 }
 0xa64   : > { %v2143_v60 = vpop.f32.mrf.mxu1 }
 0xa65   : > { %v2144_v61 = vadd.f32 %v2720_v53, %v2143_v60  ;;  %v2151_v62 = vsel %vm1695_vm10, %v3751_v59, 0.0  ;;  %v2732_v53 = vld [vmem:[%s963_s14] ss:$0 sm:$0xff] }
 0xa66   : > { %2152 = vadd.xlane.f32.xlu1 %v2151_v62  ;;  %v2890_v63 = vpop.f32.mrf.mxu1 }
 0xa67   : > { %v3756_v0 = vadd.f32 %v2144_v61, %v3662_v58 }
 0xa69   : > { %v2154_v1 = vsel %vm1699_vm11, %v3756_v0, 0.0 }
 0xa6a   : > { %2155 = vadd.xlane.f32.xlu0 %v2154_v1 }
 0xaef   : > { %v2153_v2 = vpop.xlane.xlu1 %2152 }
 0xaf0   : > { %v2157_v3 = vmul.f32 0.03125, %v2153_v2 }
 0xaf2   : > { %v2159_v57 = vsub.f32 %v3751_v59, %v2157_v3 }
 0xaf3   : > { %v2156_v4 = vpop.xlane.xlu0 %2155 }
 0xaf4   : > { %v2158_v5 = vmul.f32 0.03125, %v2156_v4  ;;  %v2161_v6 = vmul.f32 %v2159_v57, %v2159_v57 }
 0xaf6   : > { %v2160_v7 = vsub.f32 %v3756_v0, %v2158_v5  ;;  %v2163_v9 = vsel %vm1695_vm10, %v2161_v6, 0.0 }
 0xaf7   : > { %2164 = vadd.xlane.f32.xlu1 %v2163_v9 }
 0xaf8   : > { %v2162_v10 = vmul.f32 %v2160_v7, %v2160_v7 }
 0xafa   : > { %v2166_v58 = vsel %vm1699_vm11, %v2162_v10, 0.0 }
 0xafb   : > { %2167 = vadd.xlane.f32.xlu1 %v2166_v58 }
 0xb80   : > { %v2165_v13 = vpop.xlane.xlu1 %2164 }
 0xb81   : > { %v2169_v14 = vmul.f32 0.03125, %v2165_v13 }
 0xb83   : > { %v2171_v15 = vadd.f32 1e-05, %v2169_v14 }
 0xb84   : > { %v2168_v16 = vpop.xlane.xlu1 %2167 }
 0xb85   : > { %3088 = vrsqrt.f32 %v2171_v15  ;;  %v2170_v17 = vmul.f32 0.03125, %v2168_v16 }
 0xb87   : > { %v2172_v18 = vadd.f32 1e-05, %v2170_v17 }
 0xb89   : > { %3090 = vrsqrt.f32 %v2172_v18 }
 0xb92   : > { %v3089_v19 = vpop.eup %3088 }
 0xb93   : > { %v2175_v20 = vmul.f32 %v3089_v19, %v2159_v57 }
 0xb95   : > { %v2183_v24 = vmul.f32 %v2724_v21, %v2175_v20 }
 0xb96   : > { %v3091_v22 = vpop.eup %3090 }
 0xb97   : > { %v2176_v23 = vmul.f32 %v3091_v22, %v2160_v7  ;;  %v2191_v27 = vadd.f32 %v2725_v25, %v2183_v24 }
 0xb99   : > { %v2184_v26 = vmul.f32 %v2724_v21, %v2176_v23 }
 0xb9b   : > { %v2192_v28 = vadd.f32 %v2725_v25, %v2184_v26 }
 0xb9d   : > { %v2193_v29 = vpack.c.bf16 %v2192_v28, %v2191_v27 }
 0xb9f   : > { %2896 = vmatmul.mubr.msk.bf16.vlgmr.msra.gmra.mxu0 %vm1695_vm10, %v2193_v29 }
 0xc5f   : > { %v2254_v35 = vpop.f32.mrf.mxu0 }
 0xc60   : > { %v2255_v36 = vadd.f32 %v2726_v34, %v2254_v35 }
 0xc61   : > { %v2897_v37 = vpop.f32.mrf.mxu0 }
 0xc62   : > { %v2730_v38 = vmul.f32 -1.702, %v2255_v36 }
 0xc63   : > { %v2257_v39 = vpop.f32.mrf.mxu0 }
 0xc64   : > { %v2265_v40 = vmul.f32 1.442695, %v2730_v38  ;;  %v2258_v41 = vadd.f32 %v2726_v34, %v2257_v39 }
 0xc65   : > { %v2898_v42 = vpop.f32.mrf.mxu0 }
 0xc66   : > { %3092 = vpow2.f32 %v2265_v40  ;;  %v2731_v43 = vmul.f32 -1.702, %v2258_v41 }
 0xc68   : > { %v2267_v44 = vmul.f32 1.442695, %v2731_v43 }
 0xc6a   : > { %3094 = vpow2.f32 %v2267_v44 }
 0xc73   : > { %v3093_v8 = vpop.eup %3092 }
 0xc74   : > { %v2269_v45 = vadd.f32 1.0, %v3093_v8 }
 0xc76   : > { %3096 = vrcp.f32 %v2269_v45 }
 0xc77   : > { %v3095_v46 = vpop.eup %3094 }
 0xc78   : > { %v2270_v47 = vadd.f32 1.0, %v3095_v46 }
 0xc7a   : > { %3098 = vrcp.f32 %v2270_v47 }
 0xc83   : > { %v3097_v48 = vpop.eup %3096 }
 0xc84   : > { %v2275_v50 = vmul.f32 %v3097_v48, %v2255_v36 }
 0xc87   : > { %v3099_v49 = vpop.eup %3098 }
 0xc88   : > { %v2276_v51 = vmul.f32 %v3099_v49, %v2258_v41 }
 0xc8a   : > { %v2277_v52 = vpack.c.bf16 %v2276_v51, %v2275_v50 }
 0xc8c   : > { %2908 = vmatmul.mubr.msk.bf16.vlgmr.msra.gmra.mxu1 %vm2317_vm2, %v2277_v52 }
 0xd4c   : > { %v2355_v54 = vpop.f32.mrf.mxu1 }
 0xd4d   : > { %v2356_v55 = vadd.f32 %v2732_v53, %v2355_v54 }
 0xd4e   : > { %v2909_v56 = vpop.f32.mrf.mxu1 }
 0xd4f   : > { %v2362_v60 = vadd.f32 %v2356_v55, %v3751_v59 }
 0xd50   : > { %v2358_v61 = vpop.f32.mrf.mxu1 }
 0xd51   : > { %2364 = vst.msk [vmem:[#allocation2] sm:$0xff] %vm1695_vm10, %v2362_v60  ;;  %v2359_v62 = vadd.f32 %v2732_v53, %v2358_v61  ;;  %2369 = sbr.rel (%p2738_p2) target bundleno = 3723 (0xe8b), region = 124 }
 0xd52   : > { %v2910_v63 = vpop.f32.mrf.mxu1 }
 0xd53   : > { %v2363_v1 = vadd.f32 %v2359_v62, %v3756_v0 }
 0xd55   : > { %2365 = vst.msk [vmem:[#allocation2 + $0x8] sm:$0x1] %vm1699_vm11, %v2363_v1 }
 0xd56   : > { %v2374_v2 = vsel %vm1699_vm11, %v2362_v60, 0.0  ;;  %2370 = vst.msk [vmem:[%s3478_s11] sm:$0xff] %vm1695_vm10, %v2362_v60  ;;  %v2372_v10 = vld [vmem:[%s3970_s1] sm:$0x1] }
 0xd57   : > { %2371 = vst.msk [vmem:[%s3478_s11 + $0x8] sm:$0x1] %vm1699_vm11, %v2363_v1  ;;  %2375 = vadd.xlane.f32.xlu0 %v2374_v2  ;;  %v2373_v11 = vld [vmem:[%s3971_s25] sm:$0x1] }
 0xde0   : > { %v2376_v59 = vpop.xlane.xlu0 %2375 }
 0xde1   : > { %v2377_v3 = vmul.f32 0.03125, %v2376_v59 }
 0xde3   : > { %v2378_v57 = vsub.f32 %v2362_v60, %v2377_v3 }
 0xde5   : > { %v2379_v4 = vmul.f32 %v2378_v57, %v2378_v57 }
 0xde7   : > { %v2380_v0 = vsel %vm1699_vm11, %v2379_v4, 0.0 }
 0xde8   : > { %2381 = vadd.xlane.f32.xlu0 %v2380_v0 }
 0xe71   : > { %v2382_v5 = vpop.xlane.xlu0 %2381 }
 0xe72   : > { %v2383_v6 = vmul.f32 0.03125, %v2382_v5 }
 0xe74   : > { %v2384_v7 = vadd.f32 1e-05, %v2383_v6 }
 0xe76   : > { %3100 = vrsqrt.f32 %v2384_v7 }
 0xe83   : > { %v3101_v9 = vpop.eup %3100 }
 0xe84   : > { %v2386_v58 = vmul.f32 %v3101_v9, %v2378_v57 }
 0xe86   : > { %v2387_v12 = vmul.f32 %v2386_v58, %v2372_v10 }
 0xe88   : > { %v2388_v13 = vadd.f32 %v2387_v12, %v2373_v11 }
 0xe8a   : > { %2389 = vst.msk [vmem:[%s3482_s30] sm:$0x1] %vm1699_vm11, %v2388_v13 }
 0xe8b PF: > { %s3972_s2 = sld [smem:[#allocation9_spill]]  ;;  %s2411_s28 = sshll.u32 %s3482_s30, 4  ;;  %s2412_s28 = int_to_ptr.vmem [resolvable:$true] %s2411_s28 }
 0xe8c   : > { %s3974_s7 = sld [smem:[#allocation38_spill]]  ;;  %s3975_s8 = sand.u32 1, %s3170_s26  }
 0xe8d   : > { %s2396_s18 = scalar_lea.sflag [#allocation4], %s3975_s8  ;;  %s3102_s24 = scalar_lea.vmem %s2412_s28, 16 }
 0xe8e   : > { %p3103_p4 = scmp.ne.s32.totalorder %s2412_s28, %s3102_s24  ;;  %s3208_s20 = smov [#allocation3]  }
 0xe8f   : > { %s3106_s19 = sshll.u32 %s3208_s20, 4  ;;  %s3107_s19 = int_to_ptr.vmem [resolvable:$false] %s3106_s19 }
 0xe90   : > { %p3104_p5 = pnand %p3103_p4, %p3383_p3  ;;  %s3108_s13 = scalar_lea.vmem %s3107_s19, 32 }
 0xe91   : > { %s2739_s21 = sshll.u32 %s3972_s2, 4  ;;  %p3109_p7 = scmp.lt.s32.totalorder %s2412_s28, %s3107_s19 }
 0xe92   : > { %s2409_s27 = scalar_lea.hbm %s3974_s7, %s2739_s21  ;;  %p3105_p6 = pneg %p3104_p5 }
 0xe93   : > { %p3110_p8 = scmp.lt.s32.totalorder %s3108_s13, %s3102_s24 }
 0xe95   : > { %p3111_p10 = por %p3110_p8, %p3109_p7 }
 0xe97   : > { %p3112_p11 = pnand %p3111_p10, %p3105_p6 }
 0xe99   : > { %3115 = shalt.err (!%p3112_p11)
}
 0xe9a   : > { %s3116_s15 = scalar_lea.hbm %s2409_s27, 16  ;;  %s3120_s0 = scalar_lea.hbm %s3974_s7, 32 }
 0xe9b   : > { %p3117_p12 = scmp.ne.s32.totalorder %s2409_s27, %s3116_s15  ;;  %p3121_p1 = scmp.lt.s32.totalorder %s2409_s27, %s3974_s7 }
 0xe9c   : > { %p3122_p2 = scmp.lt.s32.totalorder %s3120_s0, %s3116_s15 }
 0xe9d   : > { %p3118_p13 = pnand %p3117_p12, %p3383_p3 }
 0xe9e   : > { %p3123_p4 = por %p3122_p2, %p3121_p1 }
 0xe9f   : > { %p3119_p0 = pneg %p3118_p13 }
 0xea1   : > { %p3124_p5 = pnand %p3123_p4, %p3119_p0 }
 0xea3   : > { %3127 = shalt.err (!%p3124_p5)
}
 0xea4   : > { %2912 = dma.vmem_to_hbm [thread:$0]  (%p3383_p3), %s2412_s28, 16, %s2409_s27, %s2396_s18  }
 0xea5 PF: > { %s3976_s1 = sld [smem:[#allocation12_spill]] }
 0xea6   : > { %s3977_s11 = sld [smem:[#allocation6_spill]] }
 0xeab   : > { %p2918_p6 = scmp.ge.s32.totalorder %s3976_s1, 2 }
 0xeac   : > { %s2431_s25 = sand.u32 1, %s3977_s11  }
 0xead   : > { %p2915_p7 = pnand %p2918_p6, %p3393_p9  ;;  %s2432_s2 = scalar_lea.sflag [#allocation4], %s2431_s25 }
 0xeaf   : > { %p2916_p8 = pneg %p2915_p7 }
 0xeb1   : > { %3161 = dma.done.wait (%p2916_p8), %s2432_s2, 16  }
 0xeb2   : > { %3163 = vsyncadd (%p2916_p8), %s2432_s2, 4294967280  ;;  %s38_s0 = sadd.s32 1, %s3976_s1   ;;  %s3979_s21 = sld [smem:[#allocation7_spill]] }
 0xeb3   : > { %p35_p10 = scmp.ge.s32.totalorder %s38_s0, 6   ;;  %s3980_s27 = sld [smem:[#allocation17_spill]] }
 0xeb4   : > { %s3981_s28 = sld [smem:[#allocation10_spill]]  ;;  %s3985_s5 = smov %s3170_s26 }
 0xeb5   : > { %s3982_s6 = sld [smem:[#allocation11_spill]]  ;;  %37 = sbr.rel (!%p35_p10) target bundleno = 26 (0x1a), region = 210 }
 0xeb6   : > { %s3983_s2 = sld [smem:[#allocation13_spill]] }
 0xeb7   : > { %s3984_s29 = sld [smem:[#allocation15_spill]] }
 0xeb8   : > { %s3986_s26 = smov %s3979_s21 }
 0xeba   :  { %2436 = vsyncpa [#allocation4], 1 }
 0xebb   :  { %2438 = vsyncpa [#allocation4 + $0x1], 1 }

</bundles_post_ra>
